<compile_context>
chip_gen: v7x
topology: tpu7x:2x2x1
jax: 0.10.0
libtpu: 0.0.40
codegen_flags: <defaults>
</compile_context>

<pallas_src>
import math
import functools

import jax
import jax.numpy as jnp
from jax import lax
from jax.experimental import pallas as pl
from jax.experimental.pallas import tpu as pltpu


# ----------------------------------------------------------------------------
# small config (mirrors LlamaConfig semantics at reduced sizes)
# ----------------------------------------------------------------------------
DIM = 32            # config.dim
HIDDEN_DIM = 48     # config.hidden_dim  -> FFN hidden = int(4*48/3) = 64
VOCAB = 64          # config.vocab_size
N_LAYERS = 2        # config.n_layers
N_HEADS = 4         # config.n_heads
N_KV_HEADS = 4      # config.n_kv_heads (== n_heads -> n_rep = 1)
MAX_SEQ_LEN = 16    # config.max_seq_len
HEAD_DIM = DIM // N_HEADS
FFN_HIDDEN = int(4 * HIDDEN_DIM / 3)          # 64

BATCH = 2
SEQ = 8
NEG_INF = -1e30

LANE = 128
QKV_W = ((3 * DIM + LANE - 1) // LANE) * LANE       # 96 -> 128 lane-dense
VOCAB_PAD = ((VOCAB + LANE - 1) // LANE) * LANE     # 64 -> 128 lane-dense


def _log2(n):
    l = int(n).bit_length() - 1
    assert (1 << l) == n, f"{n} must be a power of two"
    return l


def _rmsnorm(x, w, eps=1e-6):
    ms = jnp.mean(x * x, axis=-1, keepdims=True)
    return x * lax.rsqrt(ms + eps) * w


# ----------------------------------------------------------------------------
# Pallas kernel: full Llama forward (all layers + final norm + lm_head)
# ----------------------------------------------------------------------------
def llama_fwd_kernel(x_ref, anw_ref, wqkv_ref, wo_ref, fnw_ref, w13_ref,
                     w2_ref, cos_ref, sino_ref, sine_ref, nfw_ref, wlm_ref,
                     o_ref, *, n_layers, n_heads, head_dim, batch, seq):
    dim = n_heads * head_dim
    bs = batch * seq
    hbs = n_heads * bs
    bf16 = jnp.bfloat16
    f32 = jnp.float32

    h = x_ref[...]                                   # (BS, D) f32 residual

    # ---- layer-invariant masks, built in-kernel from iota (no DMAs) --------
    # per-head lane mask: sublane block hh keeps lanes [hh*hd, (hh+1)*hd)
    rh = lax.broadcasted_iota(jnp.int32, (hbs, dim), 0) >> _log2(bs)
    lh = lax.broadcasted_iota(jnp.int32, (hbs, dim), 1) >> _log2(head_dim)
    head_mask = jnp.where(rh == lh, 1.0, 0.0).astype(f32)        # (H*BS, D)
    head_mask_bf = head_mask.astype(bf16)

    # head-stacked causal + same-batch mask: (H*BS, BS)
    r = lax.broadcasted_iota(jnp.int32, (hbs, bs), 0) & (bs - 1)  # query row
    c = lax.broadcasted_iota(jnp.int32, (hbs, bs), 1)             # key col
    same_b = (r >> _log2(seq)) == (c >> _log2(seq))
    score_mask = jnp.where(jnp.logical_and(same_b, c <= r), 0.0, NEG_INF)

    cos = cos_ref[...]      # (BS, QKV_W): cos over [Q|K] lanes, 1 over V/pad
    sin_o = sino_ref[...]   # (BS, QKV_W): +sin at odd RoPE lanes, else 0
    sin_e = sine_ref[...]   # (BS, QKV_W): -sin at even RoPE lanes, else 0
    qkv_w = cos.shape[-1]

    for l in range(n_layers):                         # static layer loop
        # -------- attention block --------
        xn = _rmsnorm(h, anw_ref[l])
        qkv = jnp.dot(xn.astype(bf16), wqkv_ref[l],
                      preferred_element_type=f32)     # (BS, 128) lane-dense

        # RoPE via XLU lane rolls (no MXU push); wrap lanes hit zero sin.
        qkv = (qkv * cos
               + pltpu.roll(qkv, 1, 1) * sin_o
               + pltpu.roll(qkv, qkv_w - 1, 1) * sin_e)

        qkv_bf = qkv.astype(bf16)                     # cast once, slice bf16
        q_all = qkv_bf[:, :dim]                       # (BS, D)
        k_all = qkv_bf[:, dim:2 * dim]                # (BS, D)
        v_all = qkv_bf[:, 2 * dim:3 * dim]            # (BS, D)

        # One score matmul for all heads: repeat Q along sublanes and zero the
        # lanes outside each head; (masked Q) . (full K row) == per-head QK^T
        # (Wq already carries 1/sqrt(head_dim)).
        q_rep = jnp.concatenate([q_all] * n_heads, axis=0)        # (H*BS, D)
        q_hd = q_rep * head_mask_bf
        s_all = lax.dot_general(q_hd, k_all, (((1,), (1,)), ((), ())),
                                preferred_element_type=f32)       # (H*BS, BS)
        s_all = s_all + score_mask
        s_all = s_all - jnp.max(s_all, axis=-1, keepdims=True)
        p_all = jnp.exp(s_all)
        p_all = p_all * pl.reciprocal(
            jnp.sum(p_all, axis=-1, keepdims=True), approx=True)

        # One PV matmul for all heads; per-head lane mask + sublane reduction
        # rebuilds concat(o_h) without any lane concatenation; then one Wo.
        ctx = jnp.dot(p_all.astype(bf16), v_all,
                      preferred_element_type=f32)                 # (H*BS, D)
        ctx = ctx * head_mask
        attn_ctx = ctx[0:bs]
        for hh in range(1, n_heads):
            attn_ctx = attn_ctx + ctx[hh * bs:(hh + 1) * bs]      # (BS, D)

        h = h + jnp.dot(attn_ctx.astype(bf16), wo_ref[l],
                        preferred_element_type=f32)

        # -------- SwiGLU feed-forward block --------
        hn = _rmsnorm(h, fnw_ref[l])
        a13 = jnp.dot(hn.astype(bf16), w13_ref[l],
                      preferred_element_type=f32)     # (BS, 2F=128) fused W1|W3
        f = a13.shape[-1] // 2
        g = a13[:, :f]
        g = g * jax.nn.sigmoid(g) * a13[:, f:]        # SiLU(w1 x) * (w3 x)
        h = h + jnp.dot(g.astype(bf16), w2_ref[l], preferred_element_type=f32)

    # ---- final RMSNorm + tied lm_head: one matmul, one lane-dense store ----
    hn = _rmsnorm(h, nfw_ref[...])
    last = jnp.concatenate(
        [hn[(b + 1) * seq - 1:(b + 1) * seq, :] for b in range(batch)], axis=0)
    o_ref[...] = jnp.dot(last.astype(bf16), wlm_ref[...],
                         preferred_element_type=f32)  # (B, 128), V padded


# ----------------------------------------------------------------------------
# wrapper: pack/fuse/pad weights, then one pallas_call for the whole forward
# ----------------------------------------------------------------------------
def pack_params(embedding, layers, final_norm):
    scale = 1.0 / math.sqrt(HEAD_DIM)                 # folded into Wq
    zq = jnp.zeros((DIM, QKV_W - 3 * DIM), jnp.float32)
    anw = jnp.stack([lp["attn_norm"] for lp in layers])              # (L,1,D)
    fnw = jnp.stack([lp["ffn_norm"] for lp in layers])               # (L,1,D)
    wqkv = jnp.stack([jnp.concatenate(
        [lp["wq_t"] * scale, lp["wk_t"], lp["wv_t"], zq], axis=1)
        for lp in layers]).astype(jnp.bfloat16)                      # (L,D,128)
    wo = jnp.stack([lp["wo_t"] for lp in layers]).astype(jnp.bfloat16)
    w13 = jnp.stack([jnp.concatenate([lp["w1_t"], lp["w3_t"]], axis=1)
                     for lp in layers]).astype(jnp.bfloat16)         # (L,D,2F)
    w2 = jnp.stack([lp["w2_t"] for lp in layers]).astype(jnp.bfloat16)
    wlm = jnp.concatenate(
        [embedding.T, jnp.zeros((DIM, VOCAB_PAD - VOCAB), jnp.float32)],
        axis=1).astype(jnp.bfloat16)                                 # (D, 128)
    return anw, wqkv, wo, fnw, w13, w2, final_norm, wlm


def llama_forward_pallas(tokens, embedding, layers, final_norm,
                         cos2, sino2, sine2):
    B, S = tokens.shape
    V, D = embedding.shape
    L = len(layers)
    F = FFN_HIDDEN
    F2 = 2 * F

    anw, wqkv, wo, fnw, w13, w2, nfw, wlm = pack_params(
        embedding, layers, final_norm)
    x2d = embedding[tokens].reshape(B * S, D)   # token-embedding gather (glue)

    kernel = functools.partial(
        llama_fwd_kernel, n_layers=L, n_heads=N_HEADS, head_dim=HEAD_DIM,
        batch=B, seq=S)

    in_specs = [
        pl.BlockSpec((B * S, D), lambda i: (0, 0)),            # x (batch folded)
        pl.BlockSpec((L, 1, D), lambda i: (0, 0, 0)),          # attn norm w
        pl.BlockSpec((L, D, QKV_W), lambda i: (0, 0, 0)),      # fused Wqkv (pad)
        pl.BlockSpec((L, D, D), lambda i: (0, 0, 0)),          # Wo
        pl.BlockSpec((L, 1, D), lambda i: (0, 0, 0)),          # ffn norm w
        pl.BlockSpec((L, D, F2), lambda i: (0, 0, 0)),         # fused W1|W3
        pl.BlockSpec((L, F, D), lambda i: (0, 0, 0)),          # W2
        pl.BlockSpec((B * S, QKV_W), lambda i: (0, 0)),        # RoPE cos table
        pl.BlockSpec((B * S, QKV_W), lambda i: (0, 0)),        # RoPE +sin (odd)
        pl.BlockSpec((B * S, QKV_W), lambda i: (0, 0)),        # RoPE -sin (even)
        pl.BlockSpec((1, D), lambda i: (0, 0)),                # final norm w
        pl.BlockSpec((D, VOCAB_PAD), lambda i: (0, 0)),        # tied lm_head (pad)
    ]
    out_specs = pl.BlockSpec((B, VOCAB_PAD), lambda i: (0, 0))

    # NOTE(v7x): keep a single grid point on one TensorCore at this size --
    # with B*S=16 the kernel is latency-bound and splitting over 2 TCs would
    # only duplicate weight DMAs and add per-core step overhead.
    logits_pad = pl.pallas_call(
        kernel,
        out_shape=jax.ShapeDtypeStruct((B, VOCAB_PAD), jnp.float32),
        grid=(1,),
        in_specs=in_specs,
        out_specs=out_specs,
        compiler_params=pltpu.CompilerParams(
            dimension_semantics=("arbitrary",)),
    )(x2d, anw, wqkv, wo, fnw, w13, w2, cos2, sino2, sine2, nfw, wlm)
    return logits_pad[:, :VOCAB].reshape(B, 1, VOCAB)


# ----------------------------------------------------------------------------
# parameter init (deterministic, mirrors Llama._init_weights shapes/dists)
# ----------------------------------------------------------------------------
def init_params(key):
    def nrm(k, shape):
        return (0.02 * jax.random.normal(k, shape)).astype(jnp.float32)

    keys = jax.random.split(key, 1 + N_LAYERS * 7)
    embedding = nrm(keys[0], (VOCAB, DIM))            # tied with lm_head
    layers = []
    ki = 1
    for _ in range(N_LAYERS):
        layers.append(dict(
            attn_norm=jnp.ones((1, DIM), jnp.float32),
            ffn_norm=jnp.ones((1, DIM), jnp.float32),
            wq_t=nrm(keys[ki + 0], (DIM, DIM)),
            wk_t=nrm(keys[ki + 1], (DIM, DIM)),
            wv_t=nrm(keys[ki + 2], (DIM, DIM)),
            wo_t=nrm(keys[ki + 3], (DIM, DIM)),
            w1_t=nrm(keys[ki + 4], (DIM, FFN_HIDDEN)),
            w3_t=nrm(keys[ki + 5], (DIM, FFN_HIDDEN)),
            w2_t=nrm(keys[ki + 6], (FFN_HIDDEN, DIM)),
        ))
        ki += 7
    final_norm = jnp.ones((1, DIM), jnp.float32)
    return embedding, layers, final_norm


def make_rope_tables(batch, seq, head_dim, n_heads, width, theta=10000.0):
    """Per-row RoPE tables over the fused (BS, width) QKV slab.

    cos2:  cos(theta) on [Q|K] lanes, 1.0 on V / padding lanes.
    sino2: +sin(theta) on odd  [Q|K] lanes, 0 elsewhere (pairs with roll +1).
    sine2: -sin(theta) on even [Q|K] lanes, 0 elsewhere (pairs with roll -1).
    """
    j = jnp.arange(0, head_dim, 2)[: head_dim // 2].astype(jnp.float32)
    freqs = 1.0 / (theta ** (j / head_dim))           # (hd/2,)
    t = jnp.arange(seq, dtype=jnp.float32)
    ang = jnp.outer(t, freqs)                         # (S, hd/2)
    cos_hd, sin_hd = jnp.cos(ang), jnp.sin(ang)
    two_d = 2 * n_heads * head_dim
    cos_qk = jnp.tile(jnp.repeat(cos_hd, 2, axis=-1), (1, 2 * n_heads))  # (S,2D)
    sin_qk = jnp.tile(jnp.repeat(sin_hd, 2, axis=-1), (1, 2 * n_heads))  # (S,2D)
    even = (jnp.arange(two_d) % 2 == 0)[None, :]
    sin_even_qk = jnp.where(even, -sin_qk, 0.0)
    sin_odd_qk = jnp.where(even, 0.0, sin_qk)
    pad = width - two_d
    cos_row = jnp.concatenate([cos_qk, jnp.ones((seq, pad), jnp.float32)], 1)
    so_row = jnp.concatenate([sin_odd_qk, jnp.zeros((seq, pad), jnp.float32)], 1)
    se_row = jnp.concatenate([sin_even_qk, jnp.zeros((seq, pad), jnp.float32)], 1)
    cos2 = jnp.tile(cos_row, (batch, 1))
    sino2 = jnp.tile(so_row, (batch, 1))
    sine2 = jnp.tile(se_row, (batch, 1))
    return cos_hd, sin_hd, cos2, sino2, sine2


# ----------------------------------------------------------------------------
# pure-JAX reference (mirrors the PyTorch forward, full f32) for sanity check
# ----------------------------------------------------------------------------
def llama_forward_ref(tokens, embedding, layers, final_norm,
                      cos_hd, sin_hd, mask):
    def rms(x, w):
        return x * lax.rsqrt(jnp.mean(x * x, -1, keepdims=True) + 1e-6) * w

    def rope(t):
        B, S, H, hd = t.shape
        tr = t.reshape(B, S, H, hd // 2, 2)
        re, im = tr[..., 0], tr[..., 1]
        c = cos_hd[None, :, None, :]
        s = sin_hd[None, :, None, :]
        out = jnp.stack([re * c - im * s, re * s + im * c], axis=-1)
        return out.reshape(B, S, H, hd)

    h = embedding[tokens]
    B, S, D = h.shape
    for lp in layers:
        xn = rms(h, lp["attn_norm"])
        xq = (xn @ lp["wq_t"]).reshape(B, S, N_HEADS, HEAD_DIM)
        xk = (xn @ lp["wk_t"]).reshape(B, S, N_HEADS, HEAD_DIM)
        xv = (xn @ lp["wv_t"]).reshape(B, S, N_HEADS, HEAD_DIM)
        xq, xk = rope(xq), rope(xk)
        q, k, v = (a.transpose(0, 2, 1, 3) for a in (xq, xk, xv))
        sc = jnp.einsum("bhqd,bhkd->bhqk", q, k) / math.sqrt(HEAD_DIM) + mask
        p = jax.nn.softmax(sc, axis=-1)
        out = jnp.einsum("bhqk,bhkd->bhqd", p, v).transpose(0, 2, 1, 3)
        h = h + out.reshape(B, S, D) @ lp["wo_t"]
        hn = rms(h, lp["ffn_norm"])
        h = h + (jax.nn.silu(hn @ lp["w1_t"]) * (hn @ lp["w3_t"])) @ lp["w2_t"]
    hn = rms(h, final_norm)
    return hn[:, -1:, :] @ embedding.T


if __name__ == "__main__":
    key = jax.random.PRNGKey(0)
    pkey, tkey = jax.random.split(key)
    embedding, layers, final_norm = init_params(pkey)
    tokens = jax.random.randint(tkey, (BATCH, SEQ), 0, VOCAB)

    cos_hd, sin_hd, cos2, sino2, sine2 = make_rope_tables(
        BATCH, SEQ, HEAD_DIM, N_HEADS, QKV_W)
    mask = jnp.triu(jnp.full((SEQ, SEQ), NEG_INF, jnp.float32), k=1)

    logits = llama_forward_pallas(tokens, embedding, layers, final_norm,
                                  cos2, sino2, sine2)
    logits = jax.block_until_ready(logits)

    ref = llama_forward_ref(tokens, embedding, layers, final_norm,
                            cos_hd, sin_hd, mask)
    ref = jax.block_until_ready(ref)

    assert logits.shape == (BATCH, 1, VOCAB)
    # kernel uses bf16 matmul inputs (f32 accumulation) + approx reciprocal in
    # the softmax vs. a pure-f32 reference, hence the relaxed tolerance.
    max_err = float(jnp.max(jnp.abs(logits - ref)))
    assert jnp.allclose(logits, ref, atol=2e-2, rtol=2e-2), max_err
    print("KERNEL_OK")
</pallas_src>

<mosaic_0001>
module attributes {stable_mosaic.version = 11 : i64} {
  func.func @llama_fwd_kernel(%arg0: i32, %arg1: memref<16x32xf32, #tpu.memory_space<vmem>>, %arg2: memref<2x1x32xf32, #tpu.memory_space<vmem>>, %arg3: memref<2x32x128xbf16, #tpu.memory_space<vmem>>, %arg4: memref<2x32x32xbf16, #tpu.memory_space<vmem>>, %arg5: memref<2x1x32xf32, #tpu.memory_space<vmem>>, %arg6: memref<2x32x128xbf16, #tpu.memory_space<vmem>>, %arg7: memref<2x64x32xbf16, #tpu.memory_space<vmem>>, %arg8: memref<16x128xf32, #tpu.memory_space<vmem>>, %arg9: memref<16x128xf32, #tpu.memory_space<vmem>>, %arg10: memref<16x128xf32, #tpu.memory_space<vmem>>, %arg11: memref<1x32xf32, #tpu.memory_space<vmem>>, %arg12: memref<32x128xbf16, #tpu.memory_space<vmem>>, %arg13: memref<2x128xf32, #tpu.memory_space<vmem>>) attributes {dimension_semantics = [#tpu.dimension_semantics<arbitrary>], iteration_bounds = array<i64: 1>, scalar_prefetch = 0 : i64, scratch_operands = 0 : i64, tpu.core_type = #tpu.core_type<tc>, window_params = [{pipeline_mode = #tpu.pipeline_mode<synchronous>, transform_indices = @transform_0, window_bounds = array<i64: 16, 32>}, {pipeline_mode = #tpu.pipeline_mode<synchronous>, transform_indices = @transform_1, window_bounds = array<i64: 2, 1, 32>}, {pipeline_mode = #tpu.pipeline_mode<synchronous>, transform_indices = @transform_2, window_bounds = array<i64: 2, 32, 128>}, {pipeline_mode = #tpu.pipeline_mode<synchronous>, transform_indices = @transform_3, window_bounds = array<i64: 2, 32, 32>}, {pipeline_mode = #tpu.pipeline_mode<synchronous>, transform_indices = @transform_4, window_bounds = array<i64: 2, 1, 32>}, {pipeline_mode = #tpu.pipeline_mode<synchronous>, transform_indices = @transform_5, window_bounds = array<i64: 2, 32, 128>}, {pipeline_mode = #tpu.pipeline_mode<synchronous>, transform_indices = @transform_6, window_bounds = array<i64: 2, 64, 32>}, {pipeline_mode = #tpu.pipeline_mode<synchronous>, transform_indices = @transform_7, window_bounds = array<i64: 16, 128>}, {pipeline_mode = #tpu.pipeline_mode<synchronous>, transform_indices = @transform_8, window_bounds = array<i64: 16, 128>}, {pipeline_mode = #tpu.pipeline_mode<synchronous>, transform_indices = @transform_9, window_bounds = array<i64: 16, 128>}, {pipeline_mode = #tpu.pipeline_mode<synchronous>, transform_indices = @transform_10, window_bounds = array<i64: 1, 32>}, {pipeline_mode = #tpu.pipeline_mode<synchronous>, transform_indices = @transform_11, window_bounds = array<i64: 32, 128>}, {pipeline_mode = #tpu.pipeline_mode<synchronous>, transform_indices = @transform_12, window_bounds = array<i64: 2, 128>}]} {
    %c0 = arith.constant 0 : index
    %c0_0 = arith.constant 0 : index
    %0 = vector.load %arg1[%c0, %c0_0] : memref<16x32xf32, #tpu.memory_space<vmem>>, vector<16x32xf32>
    %1 = tpu.iota {dimensions = array<i32: 0>} : vector<64x32xi32>
    %c4_i32 = arith.constant 4 : i32
    %2 = vector.broadcast %c4_i32 : i32 to vector<64x32xi32>
    %3 = arith.shrsi %1, %2 : vector<64x32xi32>
    %4 = tpu.iota {dimensions = array<i32: 1>} : vector<64x32xi32>
    %c3_i32 = arith.constant 3 : i32
    %5 = vector.broadcast %c3_i32 : i32 to vector<64x32xi32>
    %6 = arith.shrsi %4, %5 : vector<64x32xi32>
    %7 = arith.cmpi eq, %3, %6 : vector<64x32xi32>
    %cst = arith.constant 1.000000e+00 : f32
    %cst_1 = arith.constant 0.000000e+00 : f32
    %8 = vector.broadcast %cst : f32 to vector<64x32xf32>
    %9 = vector.broadcast %cst_1 : f32 to vector<64x32xf32>
    %10 = arith.select %7, %8, %9 : vector<64x32xi1>, vector<64x32xf32>
    %11 = arith.truncf %10 : vector<64x32xf32> to vector<64x32xbf16>
    %12 = tpu.iota {dimensions = array<i32: 0>} : vector<64x16xi32>
    %c15_i32 = arith.constant 15 : i32
    %13 = vector.broadcast %c15_i32 : i32 to vector<64x16xi32>
    %14 = arith.andi %12, %13 : vector<64x16xi32>
    %15 = tpu.iota {dimensions = array<i32: 1>} : vector<64x16xi32>
    %c3_i32_2 = arith.constant 3 : i32
    %16 = vector.broadcast %c3_i32_2 : i32 to vector<64x16xi32>
    %17 = arith.shrsi %14, %16 : vector<64x16xi32>
    %c3_i32_3 = arith.constant 3 : i32
    %18 = vector.broadcast %c3_i32_3 : i32 to vector<64x16xi32>
    %19 = arith.shrsi %15, %18 : vector<64x16xi32>
    %20 = arith.cmpi eq, %17, %19 : vector<64x16xi32>
    %21 = arith.cmpi sle, %15, %14 : vector<64x16xi32>
    %22 = arith.andi %20, %21 : vector<64x16xi1>
    %cst_4 = arith.constant 0.000000e+00 : f32
    %cst_5 = arith.constant -1.000000e+30 : f32
    %23 = vector.broadcast %cst_4 : f32 to vector<64x16xf32>
    %24 = vector.broadcast %cst_5 : f32 to vector<64x16xf32>
    %25 = arith.select %22, %23, %24 : vector<64x16xi1>, vector<64x16xf32>
    %c0_6 = arith.constant 0 : index
    %c0_7 = arith.constant 0 : index
    %26 = vector.load %arg8[%c0_6, %c0_7] : memref<16x128xf32, #tpu.memory_space<vmem>>, vector<16x128xf32>
    %c0_8 = arith.constant 0 : index
    %c0_9 = arith.constant 0 : index
    %27 = vector.load %arg9[%c0_8, %c0_9] : memref<16x128xf32, #tpu.memory_space<vmem>>, vector<16x128xf32>
    %c0_10 = arith.constant 0 : index
    %c0_11 = arith.constant 0 : index
    %28 = vector.load %arg10[%c0_10, %c0_11] : memref<16x128xf32, #tpu.memory_space<vmem>>, vector<16x128xf32>
    %c0_12 = arith.constant 0 : index
    %c0_13 = arith.constant 0 : index
    %c0_14 = arith.constant 0 : index
    %29 = vector.load %arg2[%c0_12, %c0_13, %c0_14] : memref<2x1x32xf32, #tpu.memory_space<vmem>>, vector<1x1x32xf32>
    %30 = vector.shape_cast %29 : vector<1x1x32xf32> to vector<1x32xf32>
    %31 = arith.mulf %0, %0 : vector<16x32xf32>
    %cst_15 = arith.constant dense<0.000000e+00> : vector<16xf32>
    %32 = vector.multi_reduction <add>, %31, %cst_15 [1] : vector<16x32xf32> to vector<16xf32>
    %33 = vector.shape_cast %32 : vector<16xf32> to vector<16x1xf32>
    %cst_16 = arith.constant 3.200000e+01 : f32
    %34 = vector.broadcast %cst_16 : f32 to vector<16x1xf32>
    %35 = arith.divf %33, %34 : vector<16x1xf32>
    %cst_17 = arith.constant 9.99999997E-7 : f32
    %36 = vector.broadcast %cst_17 : f32 to vector<16x1xf32>
    %37 = arith.addf %35, %36 : vector<16x1xf32>
    %38 = math.rsqrt %37 : vector<16x1xf32>
    %39 = vector.broadcast %38 : vector<16x1xf32> to vector<16x32xf32>
    %40 = arith.mulf %0, %39 : vector<16x32xf32>
    %41 = vector.broadcast %30 : vector<1x32xf32> to vector<16x32xf32>
    %42 = arith.mulf %40, %41 : vector<16x32xf32>
    %43 = arith.truncf %42 : vector<16x32xf32> to vector<16x32xbf16>
    %c0_18 = arith.constant 0 : index
    %c0_19 = arith.constant 0 : index
    %c0_20 = arith.constant 0 : index
    %44 = vector.load %arg3[%c0_18, %c0_19, %c0_20] : memref<2x32x128xbf16, #tpu.memory_space<vmem>>, vector<1x32x128xbf16>
    %45 = vector.shape_cast %44 : vector<1x32x128xbf16> to vector<32x128xbf16>
    %cst_21 = arith.constant dense<0.000000e+00> : vector<16x128xf32>
    %46 = tpu.matmul %43, %45, %cst_21 {dimension_numbers = #tpu.dot_dimension_numbers<[1], [0], [0], [1], [0, 0, 1, 1], [], []>} : vector<16x32xbf16>, vector<32x128xbf16>, vector<16x128xf32> -> vector<16x128xf32>
    %47 = arith.mulf %46, %26 : vector<16x128xf32>
    %c1_i32 = arith.constant 1 : i32
    %48 = tpu.dynamic_rotate %46 by %c1_i32 dim 1 : vector<16x128xf32>, i32 -> vector<16x128xf32>
    %49 = arith.mulf %48, %27 : vector<16x128xf32>
    %50 = arith.addf %47, %49 : vector<16x128xf32>
    %c127_i32 = arith.constant 127 : i32
    %51 = tpu.dynamic_rotate %46 by %c127_i32 dim 1 : vector<16x128xf32>, i32 -> vector<16x128xf32>
    %52 = arith.mulf %51, %28 : vector<16x128xf32>
    %53 = arith.addf %50, %52 : vector<16x128xf32>
    %54 = arith.truncf %53 : vector<16x128xf32> to vector<16x128xbf16>
    %55 = vector.extract_strided_slice %54 {offsets = [0, 0], sizes = [16, 32], strides = [1, 1]} : vector<16x128xbf16> to vector<16x32xbf16>
    %56 = vector.extract_strided_slice %54 {offsets = [0, 32], sizes = [16, 32], strides = [1, 1]} : vector<16x128xbf16> to vector<16x32xbf16>
    %57 = vector.extract_strided_slice %54 {offsets = [0, 64], sizes = [16, 32], strides = [1, 1]} : vector<16x128xbf16> to vector<16x32xbf16>
    %58 = tpu.concatenate %55, %55, %55, %55 in 0 : vector<16x32xbf16>, vector<16x32xbf16>, vector<16x32xbf16>, vector<16x32xbf16> -> vector<64x32xbf16>
    %59 = arith.mulf %58, %11 : vector<64x32xbf16>
    %cst_22 = arith.constant dense<0.000000e+00> : vector<64x16xf32>
    %60 = tpu.matmul %59, %56, %cst_22 {dimension_numbers = #tpu.dot_dimension_numbers<[1], [1], [0], [0], [0, 0, 1, 0], [], []>} : vector<64x32xbf16>, vector<16x32xbf16>, vector<64x16xf32> -> vector<64x16xf32>
    %61 = arith.addf %60, %25 : vector<64x16xf32>
    %cst_23 = arith.constant dense<0xFF800000> : vector<64xf32>
    %62 = vector.multi_reduction <maximumf>, %61, %cst_23 [1] : vector<64x16xf32> to vector<64xf32>
    %63 = vector.shape_cast %62 : vector<64xf32> to vector<64x1xf32>
    %64 = vector.broadcast %63 : vector<64x1xf32> to vector<64x16xf32>
    %65 = arith.subf %61, %64 : vector<64x16xf32>
    %66 = math.exp %65 : vector<64x16xf32>
    %cst_24 = arith.constant dense<0.000000e+00> : vector<64xf32>
    %67 = vector.multi_reduction <add>, %66, %cst_24 [1] : vector<64x16xf32> to vector<64xf32>
    %68 = vector.shape_cast %67 : vector<64xf32> to vector<64x1xf32>
    %69 = tpu.reciprocal %68 {approx = true} : vector<64x1xf32> -> vector<64x1xf32>
    %70 = vector.broadcast %69 : vector<64x1xf32> to vector<64x16xf32>
    %71 = arith.mulf %66, %70 : vector<64x16xf32>
    %72 = arith.truncf %71 : vector<64x16xf32> to vector<64x16xbf16>
    %cst_25 = arith.constant dense<0.000000e+00> : vector<64x32xf32>
    %73 = tpu.matmul %72, %57, %cst_25 {dimension_numbers = #tpu.dot_dimension_numbers<[1], [0], [0], [1], [0, 0, 1, 1], [], []>} : vector<64x16xbf16>, vector<16x32xbf16>, vector<64x32xf32> -> vector<64x32xf32>
    %74 = arith.mulf %73, %10 : vector<64x32xf32>
    %75 = vector.extract_strided_slice %74 {offsets = [0, 0], sizes = [16, 32], strides = [1, 1]} : vector<64x32xf32> to vector<16x32xf32>
    %76 = vector.extract_strided_slice %74 {offsets = [16, 0], sizes = [16, 32], strides = [1, 1]} : vector<64x32xf32> to vector<16x32xf32>
    %77 = arith.addf %75, %76 : vector<16x32xf32>
    %78 = vector.extract_strided_slice %74 {offsets = [32, 0], sizes = [16, 32], strides = [1, 1]} : vector<64x32xf32> to vector<16x32xf32>
    %79 = arith.addf %77, %78 : vector<16x32xf32>
    %80 = vector.extract_strided_slice %74 {offsets = [48, 0], sizes = [16, 32], strides = [1, 1]} : vector<64x32xf32> to vector<16x32xf32>
    %81 = arith.addf %79, %80 : vector<16x32xf32>
    %82 = arith.truncf %81 : vector<16x32xf32> to vector<16x32xbf16>
    %c0_26 = arith.constant 0 : index
    %c0_27 = arith.constant 0 : index
    %c0_28 = arith.constant 0 : index
    %83 = vector.load %arg4[%c0_26, %c0_27, %c0_28] : memref<2x32x32xbf16, #tpu.memory_space<vmem>>, vector<1x32x32xbf16>
    %84 = vector.shape_cast %83 : vector<1x32x32xbf16> to vector<32x32xbf16>
    %cst_29 = arith.constant dense<0.000000e+00> : vector<16x32xf32>
    %85 = tpu.matmul %82, %84, %cst_29 {dimension_numbers = #tpu.dot_dimension_numbers<[1], [0], [0], [1], [0, 0, 1, 1], [], []>} : vector<16x32xbf16>, vector<32x32xbf16>, vector<16x32xf32> -> vector<16x32xf32>
    %86 = arith.addf %0, %85 : vector<16x32xf32>
    %c0_30 = arith.constant 0 : index
    %c0_31 = arith.constant 0 : index
    %c0_32 = arith.constant 0 : index
    %87 = vector.load %arg5[%c0_30, %c0_31, %c0_32] : memref<2x1x32xf32, #tpu.memory_space<vmem>>, vector<1x1x32xf32>
    %88 = vector.shape_cast %87 : vector<1x1x32xf32> to vector<1x32xf32>
    %89 = arith.mulf %86, %86 : vector<16x32xf32>
    %cst_33 = arith.constant dense<0.000000e+00> : vector<16xf32>
    %90 = vector.multi_reduction <add>, %89, %cst_33 [1] : vector<16x32xf32> to vector<16xf32>
    %91 = vector.shape_cast %90 : vector<16xf32> to vector<16x1xf32>
    %cst_34 = arith.constant 3.200000e+01 : f32
    %92 = vector.broadcast %cst_34 : f32 to vector<16x1xf32>
    %93 = arith.divf %91, %92 : vector<16x1xf32>
    %cst_35 = arith.constant 9.99999997E-7 : f32
    %94 = vector.broadcast %cst_35 : f32 to vector<16x1xf32>
    %95 = arith.addf %93, %94 : vector<16x1xf32>
    %96 = math.rsqrt %95 : vector<16x1xf32>
    %97 = vector.broadcast %96 : vector<16x1xf32> to vector<16x32xf32>
    %98 = arith.mulf %86, %97 : vector<16x32xf32>
    %99 = vector.broadcast %88 : vector<1x32xf32> to vector<16x32xf32>
    %100 = arith.mulf %98, %99 : vector<16x32xf32>
    %101 = arith.truncf %100 : vector<16x32xf32> to vector<16x32xbf16>
    %c0_36 = arith.constant 0 : index
    %c0_37 = arith.constant 0 : index
    %c0_38 = arith.constant 0 : index
    %102 = vector.load %arg6[%c0_36, %c0_37, %c0_38] : memref<2x32x128xbf16, #tpu.memory_space<vmem>>, vector<1x32x128xbf16>
    %103 = vector.shape_cast %102 : vector<1x32x128xbf16> to vector<32x128xbf16>
    %cst_39 = arith.constant dense<0.000000e+00> : vector<16x128xf32>
    %104 = tpu.matmul %101, %103, %cst_39 {dimension_numbers = #tpu.dot_dimension_numbers<[1], [0], [0], [1], [0, 0, 1, 1], [], []>} : vector<16x32xbf16>, vector<32x128xbf16>, vector<16x128xf32> -> vector<16x128xf32>
    %105 = vector.extract_strided_slice %104 {offsets = [0, 0], sizes = [16, 64], strides = [1, 1]} : vector<16x128xf32> to vector<16x64xf32>
    %106 = arith.negf %105 : vector<16x64xf32>
    %107 = math.exp %106 : vector<16x64xf32>
    %cst_40 = arith.constant 1.000000e+00 : f32
    %108 = vector.broadcast %cst_40 : f32 to vector<16x64xf32>
    %109 = arith.addf %108, %107 : vector<16x64xf32>
    %110 = arith.divf %108, %109 : vector<16x64xf32>
    %111 = arith.mulf %105, %110 : vector<16x64xf32>
    %112 = vector.extract_strided_slice %104 {offsets = [0, 64], sizes = [16, 64], strides = [1, 1]} : vector<16x128xf32> to vector<16x64xf32>
    %113 = arith.mulf %111, %112 : vector<16x64xf32>
    %114 = arith.truncf %113 : vector<16x64xf32> to vector<16x64xbf16>
    %c0_41 = arith.constant 0 : index
    %c0_42 = arith.constant 0 : index
    %c0_43 = arith.constant 0 : index
    %115 = vector.load %arg7[%c0_41, %c0_42, %c0_43] : memref<2x64x32xbf16, #tpu.memory_space<vmem>>, vector<1x64x32xbf16>
    %116 = vector.shape_cast %115 : vector<1x64x32xbf16> to vector<64x32xbf16>
    %cst_44 = arith.constant dense<0.000000e+00> : vector<16x32xf32>
    %117 = tpu.matmul %114, %116, %cst_44 {dimension_numbers = #tpu.dot_dimension_numbers<[1], [0], [0], [1], [0, 0, 1, 1], [], []>} : vector<16x64xbf16>, vector<64x32xbf16>, vector<16x32xf32> -> vector<16x32xf32>
    %118 = arith.addf %86, %117 : vector<16x32xf32>
    %c1 = arith.constant 1 : index
    %c0_45 = arith.constant 0 : index
    %c0_46 = arith.constant 0 : index
    %119 = vector.load %arg2[%c1, %c0_45, %c0_46] : memref<2x1x32xf32, #tpu.memory_space<vmem>>, vector<1x1x32xf32>
    %120 = vector.shape_cast %119 : vector<1x1x32xf32> to vector<1x32xf32>
    %121 = arith.mulf %118, %118 : vector<16x32xf32>
    %cst_47 = arith.constant dense<0.000000e+00> : vector<16xf32>
    %122 = vector.multi_reduction <add>, %121, %cst_47 [1] : vector<16x32xf32> to vector<16xf32>
    %123 = vector.shape_cast %122 : vector<16xf32> to vector<16x1xf32>
    %cst_48 = arith.constant 3.200000e+01 : f32
    %124 = vector.broadcast %cst_48 : f32 to vector<16x1xf32>
    %125 = arith.divf %123, %124 : vector<16x1xf32>
    %cst_49 = arith.constant 9.99999997E-7 : f32
    %126 = vector.broadcast %cst_49 : f32 to vector<16x1xf32>
    %127 = arith.addf %125, %126 : vector<16x1xf32>
    %128 = math.rsqrt %127 : vector<16x1xf32>
    %129 = vector.broadcast %128 : vector<16x1xf32> to vector<16x32xf32>
    %130 = arith.mulf %118, %129 : vector<16x32xf32>
    %131 = vector.broadcast %120 : vector<1x32xf32> to vector<16x32xf32>
    %132 = arith.mulf %130, %131 : vector<16x32xf32>
    %133 = arith.truncf %132 : vector<16x32xf32> to vector<16x32xbf16>
    %c1_50 = arith.constant 1 : index
    %c0_51 = arith.constant 0 : index
    %c0_52 = arith.constant 0 : index
    %134 = vector.load %arg3[%c1_50, %c0_51, %c0_52] : memref<2x32x128xbf16, #tpu.memory_space<vmem>>, vector<1x32x128xbf16>
    %135 = vector.shape_cast %134 : vector<1x32x128xbf16> to vector<32x128xbf16>
    %cst_53 = arith.constant dense<0.000000e+00> : vector<16x128xf32>
    %136 = tpu.matmul %133, %135, %cst_53 {dimension_numbers = #tpu.dot_dimension_numbers<[1], [0], [0], [1], [0, 0, 1, 1], [], []>} : vector<16x32xbf16>, vector<32x128xbf16>, vector<16x128xf32> -> vector<16x128xf32>
    %137 = arith.mulf %136, %26 : vector<16x128xf32>
    %c1_i32_54 = arith.constant 1 : i32
    %138 = tpu.dynamic_rotate %136 by %c1_i32_54 dim 1 : vector<16x128xf32>, i32 -> vector<16x128xf32>
    %139 = arith.mulf %138, %27 : vector<16x128xf32>
    %140 = arith.addf %137, %139 : vector<16x128xf32>
    %c127_i32_55 = arith.constant 127 : i32
    %141 = tpu.dynamic_rotate %136 by %c127_i32_55 dim 1 : vector<16x128xf32>, i32 -> vector<16x128xf32>
    %142 = arith.mulf %141, %28 : vector<16x128xf32>
    %143 = arith.addf %140, %142 : vector<16x128xf32>
    %144 = arith.truncf %143 : vector<16x128xf32> to vector<16x128xbf16>
    %145 = vector.extract_strided_slice %144 {offsets = [0, 0], sizes = [16, 32], strides = [1, 1]} : vector<16x128xbf16> to vector<16x32xbf16>
    %146 = vector.extract_strided_slice %144 {offsets = [0, 32], sizes = [16, 32], strides = [1, 1]} : vector<16x128xbf16> to vector<16x32xbf16>
    %147 = vector.extract_strided_slice %144 {offsets = [0, 64], sizes = [16, 32], strides = [1, 1]} : vector<16x128xbf16> to vector<16x32xbf16>
    %148 = tpu.concatenate %145, %145, %145, %145 in 0 : vector<16x32xbf16>, vector<16x32xbf16>, vector<16x32xbf16>, vector<16x32xbf16> -> vector<64x32xbf16>
    %149 = arith.mulf %148, %11 : vector<64x32xbf16>
    %cst_56 = arith.constant dense<0.000000e+00> : vector<64x16xf32>
    %150 = tpu.matmul %149, %146, %cst_56 {dimension_numbers = #tpu.dot_dimension_numbers<[1], [1], [0], [0], [0, 0, 1, 0], [], []>} : vector<64x32xbf16>, vector<16x32xbf16>, vector<64x16xf32> -> vector<64x16xf32>
    %151 = arith.addf %150, %25 : vector<64x16xf32>
    %cst_57 = arith.constant dense<0xFF800000> : vector<64xf32>
    %152 = vector.multi_reduction <maximumf>, %151, %cst_57 [1] : vector<64x16xf32> to vector<64xf32>
    %153 = vector.shape_cast %152 : vector<64xf32> to vector<64x1xf32>
    %154 = vector.broadcast %153 : vector<64x1xf32> to vector<64x16xf32>
    %155 = arith.subf %151, %154 : vector<64x16xf32>
    %156 = math.exp %155 : vector<64x16xf32>
    %cst_58 = arith.constant dense<0.000000e+00> : vector<64xf32>
    %157 = vector.multi_reduction <add>, %156, %cst_58 [1] : vector<64x16xf32> to vector<64xf32>
    %158 = vector.shape_cast %157 : vector<64xf32> to vector<64x1xf32>
    %159 = tpu.reciprocal %158 {approx = true} : vector<64x1xf32> -> vector<64x1xf32>
    %160 = vector.broadcast %159 : vector<64x1xf32> to vector<64x16xf32>
    %161 = arith.mulf %156, %160 : vector<64x16xf32>
    %162 = arith.truncf %161 : vector<64x16xf32> to vector<64x16xbf16>
    %cst_59 = arith.constant dense<0.000000e+00> : vector<64x32xf32>
    %163 = tpu.matmul %162, %147, %cst_59 {dimension_numbers = #tpu.dot_dimension_numbers<[1], [0], [0], [1], [0, 0, 1, 1], [], []>} : vector<64x16xbf16>, vector<16x32xbf16>, vector<64x32xf32> -> vector<64x32xf32>
    %164 = arith.mulf %163, %10 : vector<64x32xf32>
    %165 = vector.extract_strided_slice %164 {offsets = [0, 0], sizes = [16, 32], strides = [1, 1]} : vector<64x32xf32> to vector<16x32xf32>
    %166 = vector.extract_strided_slice %164 {offsets = [16, 0], sizes = [16, 32], strides = [1, 1]} : vector<64x32xf32> to vector<16x32xf32>
    %167 = arith.addf %165, %166 : vector<16x32xf32>
    %168 = vector.extract_strided_slice %164 {offsets = [32, 0], sizes = [16, 32], strides = [1, 1]} : vector<64x32xf32> to vector<16x32xf32>
    %169 = arith.addf %167, %168 : vector<16x32xf32>
    %170 = vector.extract_strided_slice %164 {offsets = [48, 0], sizes = [16, 32], strides = [1, 1]} : vector<64x32xf32> to vector<16x32xf32>
    %171 = arith.addf %169, %170 : vector<16x32xf32>
    %172 = arith.truncf %171 : vector<16x32xf32> to vector<16x32xbf16>
    %c1_60 = arith.constant 1 : index
    %c0_61 = arith.constant 0 : index
    %c0_62 = arith.constant 0 : index
    %173 = vector.load %arg4[%c1_60, %c0_61, %c0_62] : memref<2x32x32xbf16, #tpu.memory_space<vmem>>, vector<1x32x32xbf16>
    %174 = vector.shape_cast %173 : vector<1x32x32xbf16> to vector<32x32xbf16>
    %cst_63 = arith.constant dense<0.000000e+00> : vector<16x32xf32>
    %175 = tpu.matmul %172, %174, %cst_63 {dimension_numbers = #tpu.dot_dimension_numbers<[1], [0], [0], [1], [0, 0, 1, 1], [], []>} : vector<16x32xbf16>, vector<32x32xbf16>, vector<16x32xf32> -> vector<16x32xf32>
    %176 = arith.addf %118, %175 : vector<16x32xf32>
    %c1_64 = arith.constant 1 : index
    %c0_65 = arith.constant 0 : index
    %c0_66 = arith.constant 0 : index
    %177 = vector.load %arg5[%c1_64, %c0_65, %c0_66] : memref<2x1x32xf32, #tpu.memory_space<vmem>>, vector<1x1x32xf32>
    %178 = vector.shape_cast %177 : vector<1x1x32xf32> to vector<1x32xf32>
    %179 = arith.mulf %176, %176 : vector<16x32xf32>
    %cst_67 = arith.constant dense<0.000000e+00> : vector<16xf32>
    %180 = vector.multi_reduction <add>, %179, %cst_67 [1] : vector<16x32xf32> to vector<16xf32>
    %181 = vector.shape_cast %180 : vector<16xf32> to vector<16x1xf32>
    %cst_68 = arith.constant 3.200000e+01 : f32
    %182 = vector.broadcast %cst_68 : f32 to vector<16x1xf32>
    %183 = arith.divf %181, %182 : vector<16x1xf32>
    %cst_69 = arith.constant 9.99999997E-7 : f32
    %184 = vector.broadcast %cst_69 : f32 to vector<16x1xf32>
    %185 = arith.addf %183, %184 : vector<16x1xf32>
    %186 = math.rsqrt %185 : vector<16x1xf32>
    %187 = vector.broadcast %186 : vector<16x1xf32> to vector<16x32xf32>
    %188 = arith.mulf %176, %187 : vector<16x32xf32>
    %189 = vector.broadcast %178 : vector<1x32xf32> to vector<16x32xf32>
    %190 = arith.mulf %188, %189 : vector<16x32xf32>
    %191 = arith.truncf %190 : vector<16x32xf32> to vector<16x32xbf16>
    %c1_70 = arith.constant 1 : index
    %c0_71 = arith.constant 0 : index
    %c0_72 = arith.constant 0 : index
    %192 = vector.load %arg6[%c1_70, %c0_71, %c0_72] : memref<2x32x128xbf16, #tpu.memory_space<vmem>>, vector<1x32x128xbf16>
    %193 = vector.shape_cast %192 : vector<1x32x128xbf16> to vector<32x128xbf16>
    %cst_73 = arith.constant dense<0.000000e+00> : vector<16x128xf32>
    %194 = tpu.matmul %191, %193, %cst_73 {dimension_numbers = #tpu.dot_dimension_numbers<[1], [0], [0], [1], [0, 0, 1, 1], [], []>} : vector<16x32xbf16>, vector<32x128xbf16>, vector<16x128xf32> -> vector<16x128xf32>
    %195 = vector.extract_strided_slice %194 {offsets = [0, 0], sizes = [16, 64], strides = [1, 1]} : vector<16x128xf32> to vector<16x64xf32>
    %196 = arith.negf %195 : vector<16x64xf32>
    %197 = math.exp %196 : vector<16x64xf32>
    %cst_74 = arith.constant 1.000000e+00 : f32
    %198 = vector.broadcast %cst_74 : f32 to vector<16x64xf32>
    %199 = arith.addf %198, %197 : vector<16x64xf32>
    %200 = arith.divf %198, %199 : vector<16x64xf32>
    %201 = arith.mulf %195, %200 : vector<16x64xf32>
    %202 = vector.extract_strided_slice %194 {offsets = [0, 64], sizes = [16, 64], strides = [1, 1]} : vector<16x128xf32> to vector<16x64xf32>
    %203 = arith.mulf %201, %202 : vector<16x64xf32>
    %204 = arith.truncf %203 : vector<16x64xf32> to vector<16x64xbf16>
    %c1_75 = arith.constant 1 : index
    %c0_76 = arith.constant 0 : index
    %c0_77 = arith.constant 0 : index
    %205 = vector.load %arg7[%c1_75, %c0_76, %c0_77] : memref<2x64x32xbf16, #tpu.memory_space<vmem>>, vector<1x64x32xbf16>
    %206 = vector.shape_cast %205 : vector<1x64x32xbf16> to vector<64x32xbf16>
    %cst_78 = arith.constant dense<0.000000e+00> : vector<16x32xf32>
    %207 = tpu.matmul %204, %206, %cst_78 {dimension_numbers = #tpu.dot_dimension_numbers<[1], [0], [0], [1], [0, 0, 1, 1], [], []>} : vector<16x64xbf16>, vector<64x32xbf16>, vector<16x32xf32> -> vector<16x32xf32>
    %208 = arith.addf %176, %207 : vector<16x32xf32>
    %c0_79 = arith.constant 0 : index
    %c0_80 = arith.constant 0 : index
    %209 = vector.load %arg11[%c0_79, %c0_80] : memref<1x32xf32, #tpu.memory_space<vmem>>, vector<1x32xf32>
    %210 = arith.mulf %208, %208 : vector<16x32xf32>
    %cst_81 = arith.constant dense<0.000000e+00> : vector<16xf32>
    %211 = vector.multi_reduction <add>, %210, %cst_81 [1] : vector<16x32xf32> to vector<16xf32>
    %212 = vector.shape_cast %211 : vector<16xf32> to vector<16x1xf32>
    %cst_82 = arith.constant 3.200000e+01 : f32
    %213 = vector.broadcast %cst_82 : f32 to vector<16x1xf32>
    %214 = arith.divf %212, %213 : vector<16x1xf32>
    %cst_83 = arith.constant 9.99999997E-7 : f32
    %215 = vector.broadcast %cst_83 : f32 to vector<16x1xf32>
    %216 = arith.addf %214, %215 : vector<16x1xf32>
    %217 = math.rsqrt %216 : vector<16x1xf32>
    %218 = vector.broadcast %217 : vector<16x1xf32> to vector<16x32xf32>
    %219 = arith.mulf %208, %218 : vector<16x32xf32>
    %220 = vector.broadcast %209 : vector<1x32xf32> to vector<16x32xf32>
    %221 = arith.mulf %219, %220 : vector<16x32xf32>
    %222 = vector.extract_strided_slice %221 {offsets = [7, 0], sizes = [1, 32], strides = [1, 1]} : vector<16x32xf32> to vector<1x32xf32>
    %223 = vector.extract_strided_slice %221 {offsets = [15, 0], sizes = [1, 32], strides = [1, 1]} : vector<16x32xf32> to vector<1x32xf32>
    %224 = tpu.concatenate %222, %223 in 0 : vector<1x32xf32>, vector<1x32xf32> -> vector<2x32xf32>
    %225 = arith.truncf %224 : vector<2x32xf32> to vector<2x32xbf16>
    %c0_84 = arith.constant 0 : index
    %c0_85 = arith.constant 0 : index
    %226 = vector.load %arg12[%c0_84, %c0_85] : memref<32x128xbf16, #tpu.memory_space<vmem>>, vector<32x128xbf16>
    %cst_86 = arith.constant dense<0.000000e+00> : vector<2x128xf32>
    %227 = tpu.matmul %225, %226, %cst_86 {dimension_numbers = #tpu.dot_dimension_numbers<[1], [0], [0], [1], [0, 0, 1, 1], [], []>} : vector<2x32xbf16>, vector<32x128xbf16>, vector<2x128xf32> -> vector<2x128xf32>
    %c0_87 = arith.constant 0 : index
    %c0_88 = arith.constant 0 : index
    %228 = vector.load %arg13[%c0_87, %c0_88] : memref<2x128xf32, #tpu.memory_space<vmem>>, vector<2x128xf32>
    tpu.vector_store %arg13[%c0_87, %c0_88], %227 {strides = array<i32>} : memref<2x128xf32, #tpu.memory_space<vmem>>, vector<2x128xf32>,
    return
  }
  func.func @transform_0(%arg0: i32) -> (i32, i32) {
    %c0_i32 = arith.constant 0 : i32
    %c0_i32_0 = arith.constant 0 : i32
    %c0_i32_1 = arith.constant 0 : i32
    return %c0_i32, %c0_i32_0 : i32, i32
  }
  func.func @transform_1(%arg0: i32) -> (i32, i32, i32) {
    %c0_i32 = arith.constant 0 : i32
    %c0_i32_0 = arith.constant 0 : i32
    %c0_i32_1 = arith.constant 0 : i32
    %c0_i32_2 = arith.constant 0 : i32
    return %c0_i32, %c0_i32_0, %c0_i32_1 : i32, i32, i32
  }
  func.func @transform_2(%arg0: i32) -> (i32, i32, i32) {
    %c0_i32 = arith.constant 0 : i32
    %c0_i32_0 = arith.constant 0 : i32
    %c0_i32_1 = arith.constant 0 : i32
    %c0_i32_2 = arith.constant 0 : i32
    return %c0_i32, %c0_i32_0, %c0_i32_1 : i32, i32, i32
  }
  func.func @transform_3(%arg0: i32) -> (i32, i32, i32) {
    %c0_i32 = arith.constant 0 : i32
    %c0_i32_0 = arith.constant 0 : i32
    %c0_i32_1 = arith.constant 0 : i32
    %c0_i32_2 = arith.constant 0 : i32
    return %c0_i32, %c0_i32_0, %c0_i32_1 : i32, i32, i32
  }
  func.func @transform_4(%arg0: i32) -> (i32, i32, i32) {
    %c0_i32 = arith.constant 0 : i32
    %c0_i32_0 = arith.constant 0 : i32
    %c0_i32_1 = arith.constant 0 : i32
    %c0_i32_2 = arith.constant 0 : i32
    return %c0_i32, %c0_i32_0, %c0_i32_1 : i32, i32, i32
  }
  func.func @transform_5(%arg0: i32) -> (i32, i32, i32) {
    %c0_i32 = arith.constant 0 : i32
    %c0_i32_0 = arith.constant 0 : i32
    %c0_i32_1 = arith.constant 0 : i32
    %c0_i32_2 = arith.constant 0 : i32
    return %c0_i32, %c0_i32_0, %c0_i32_1 : i32, i32, i32
  }
  func.func @transform_6(%arg0: i32) -> (i32, i32, i32) {
    %c0_i32 = arith.constant 0 : i32
    %c0_i32_0 = arith.constant 0 : i32
    %c0_i32_1 = arith.constant 0 : i32
    %c0_i32_2 = arith.constant 0 : i32
    return %c0_i32, %c0_i32_0, %c0_i32_1 : i32, i32, i32
  }
  func.func @transform_7(%arg0: i32) -> (i32, i32) {
    %c0_i32 = arith.constant 0 : i32
    %c0_i32_0 = arith.constant 0 : i32
    %c0_i32_1 = arith.constant 0 : i32
    return %c0_i32, %c0_i32_0 : i32, i32
  }
  func.func @transform_8(%arg0: i32) -> (i32, i32) {
    %c0_i32 = arith.constant 0 : i32
    %c0_i32_0 = arith.constant 0 : i32
    %c0_i32_1 = arith.constant 0 : i32
    return %c0_i32, %c0_i32_0 : i32, i32
  }
  func.func @transform_9(%arg0: i32) -> (i32, i32) {
    %c0_i32 = arith.constant 0 : i32
    %c0_i32_0 = arith.constant 0 : i32
    %c0_i32_1 = arith.constant 0 : i32
    return %c0_i32, %c0_i32_0 : i32, i32
  }
  func.func @transform_10(%arg0: i32) -> (i32, i32) {
    %c0_i32 = arith.constant 0 : i32
    %c0_i32_0 = arith.constant 0 : i32
    %c0_i32_1 = arith.constant 0 : i32
    return %c0_i32, %c0_i32_0 : i32, i32
  }
  func.func @transform_11(%arg0: i32) -> (i32, i32) {
    %c0_i32 = arith.constant 0 : i32
    %c0_i32_0 = arith.constant 0 : i32
    %c0_i32_1 = arith.constant 0 : i32
    return %c0_i32, %c0_i32_0 : i32, i32
  }
  func.func @transform_12(%arg0: i32) -> (i32, i32) {
    %c0_i32 = arith.constant 0 : i32
    %c0_i32_0 = arith.constant 0 : i32
    %c0_i32_1 = arith.constant 0 : i32
    return %c0_i32, %c0_i32_0 : i32, i32
  }
}

</mosaic_0001>

<bundles_post_ra>
// kernel: tpu_custom_call.1
= control target key start
LH: loop header
LB: loop body
LE: loop exit
PB: predicated region body
PF: predicated region fallthrough
CT: control target
= control target key end

     0   :  { %17 = vsyncpa [#allocation3], 0  ;;  %s2690_s0 = inlined_call_operand.hbm [shape: f32[16,32], index: 0, kind: input, shape index: {}]   ;;  %s2691_s1 = inlined_call_operand.vmem [shape: f32[2,1,32], index: 1, kind: input, shape index: {}]   ;;  %s2692_s2 = inlined_call_operand.vmem [shape: bf16[2,32,128], index: 2, kind: input, shape index: {}]   ;;  %s2693_s3 = inlined_call_operand.vmem [shape: bf16[2,32,32], index: 3, kind: input, shape index: {}]   ;;  %s2694_s4 = inlined_call_operand.hbm [shape: f32[2,1,32], index: 4, kind: input, shape index: {}]   ;;  %s2695_s5 = inlined_call_operand.vmem [shape: bf16[2,32,128], index: 5, kind: input, shape index: {}]   ;;  %s2696_s6 = inlined_call_operand.vmem [shape: bf16[2,64,32], index: 6, kind: input, shape index: {}]   ;;  %s2697_s7 = inlined_call_operand.vmem [shape: f32[16,128], index: 7, kind: input, shape index: {}]   ;;  %s2698_s8 = inlined_call_operand.hbm [shape: f32[16,128], index: 8, kind: input, shape index: {}]   ;;  %s2699_s9 = inlined_call_operand.vmem [shape: f32[16,128], index: 9, kind: input, shape index: {}]   ;;  %s2700_s10 = inlined_call_operand.vmem [shape: f32[1,32], index: 10, kind: input, shape index: {}]   ;;  %s2701_s11 = inlined_call_operand.hbm [shape: bf16[32,128], index: 11, kind: input, shape index: {}]   ;;  %s2702_s12 = inlined_call_operand.hbm [shape: f32[2,128], index: 12, kind: output, shape index: {}]  }
   0x1   :  { %18 = vsyncpa [#allocation6], 0 }
   0x2   :  { %19 = vsyncpa [#allocation9], 0 }
   0x3   :  { %20 = vsyncpa [#allocation4], 0  ;;  %s2081_s21 = smov [#allocation5]   ;;  %s1963_s25 = scalar_lea.hbm %s2694_s4, 32 }
   0x4   :  { %s44_s22 = sshll.u32 %s2081_s21, 4  ;;  %p1964_p0 = scmp.ne.s32.totalorder %s2694_s4, %s1963_s25  ;;  %s45_s22 = int_to_ptr.vmem [resolvable:$true] %s44_s22 }
   0x5   :  { %p1967_p1 = scmp.lt.u32.totalorder %s1963_s25, %s2694_s4 }
   0x7   :  { %p1969_p2 = pnand %p1967_p1, %p1964_p0 }
   0x9   :  { %1972 = shalt.err (!%p1969_p2)
}
   0xa   :  { %s1973_s30 = scalar_lea.vmem %s45_s22, 32  ;;  %p1978_p4 = scmp.lt.s32.totalorder %s45_s22, %s45_s22 }
   0xb   :  { %p1974_p3 = scmp.ne.s32.totalorder %s45_s22, %s1973_s30  ;;  %p1979_p5 = scmp.lt.s32.totalorder %s1973_s30, %s1973_s30 }
   0xd   :  { %p1980_p6 = por %p1979_p5, %p1978_p4 }
   0xf   :  { %p1981_p7 = pnand %p1980_p6, %p1974_p3 }
  0x11   :  { %1984 = shalt.err (!%p1981_p7)
}
  0x12   :  { %s2082_s13 = smov 16   ;;  %s2083_s14 = smov 1  }
  0x13   :  { %50 = dma.hbm_to_vmem [thread:$0]  %s2694_s4, 32, %s45_s22, [#allocation6], %s2082_s13, %s2082_s13, %s2083_s14  }
  0x14   :  { %s2084_s17 = smov [#allocation2]   ;;  %s1985_s21 = scalar_lea.hbm %s2690_s0, 256 }
  0x15   :  { %s26_s18 = sshll.u32 %s2084_s17, 4  ;;  %p1986_p8 = scmp.ne.s32.totalorder %s2690_s0, %s1985_s21  ;;  %s27_s18 = int_to_ptr.vmem [resolvable:$true] %s26_s18 }
  0x16   :  { %p1989_p9 = scmp.lt.u32.totalorder %s1985_s21, %s2690_s0 }
  0x18   :  { %p1991_p10 = pnand %p1989_p9, %p1986_p8 }
  0x1a   :  { %1994 = shalt.err (!%p1991_p10)
}
  0x1b   :  { %s1995_s27 = scalar_lea.vmem %s27_s18, 256  ;;  %p2000_p12 = scmp.lt.s32.totalorder %s27_s18, %s27_s18 }
  0x1c   :  { %p1996_p11 = scmp.ne.s32.totalorder %s27_s18, %s1995_s27  ;;  %p2001_p13 = scmp.lt.s32.totalorder %s1995_s27, %s1995_s27 }
  0x1e   :  { %p2002_p0 = por %p2001_p13, %p2000_p12 }
  0x20   :  { %p2003_p1 = pnand %p2002_p0, %p1996_p11 }
  0x22   :  { %2006 = shalt.err (!%p2003_p1)
}
  0x23   :  { %s2085_s4 = smov 128   ;;  %s2086_s22 = smov 8  }
  0x24   :  { %32 = dma.hbm_to_vmem [thread:$0]  %s2690_s0, 256, %s27_s18, [#allocation3], %s2085_s4, %s2085_s4, %s2086_s22  }
  0x25   :  { %s2087_s30 = smov [#allocation7]   ;;  %s2088_s15 = smov [#allocation8]  }
  0x26   :  { %s62_s13 = sshll.u32 %s2087_s30, 4  ;;  %s78_s16 = sshll.u32 %s2088_s15, 4  ;;  %s63_s13 = int_to_ptr.vmem [resolvable:$true] %s62_s13  ;;  %s2187_s16 = int_to_ptr.vmem [resolvable:$true] %s78_s16 }
  0x27   :  { %s2007_s20 = scalar_lea.hbm %s2698_s8, 256 }
  0x28   :  { %p2008_p2 = scmp.ne.s32.totalorder %s2698_s8, %s2007_s20  ;;  %p2011_p3 = scmp.lt.u32.totalorder %s2007_s20, %s2698_s8 }
  0x2a   :  { %p2013_p4 = pnand %p2011_p3, %p2008_p2 }
  0x2c   :  { %2016 = shalt.err (!%p2013_p4)
}
  0x2d   :  { %s2017_s0 = scalar_lea.vmem %s63_s13, 256  ;;  %p2022_p6 = scmp.lt.s32.totalorder %s63_s13, %s63_s13 }
  0x2e   :  { %p2018_p5 = scmp.ne.s32.totalorder %s63_s13, %s2017_s0  ;;  %p2023_p7 = scmp.lt.s32.totalorder %s2017_s0, %s2017_s0 }
  0x30   :  { %p2024_p8 = por %p2023_p7, %p2022_p6 }
  0x32   :  { %p2025_p9 = pnand %p2024_p8, %p2018_p5 }
  0x34   :  { %2028 = shalt.err (!%p2025_p9)
}
  0x35   :  { %68 = dma.hbm_to_vmem [thread:$0]  %s2698_s8, 256, %s63_s13, [#allocation6], %s2085_s4, %s2085_s4, %s2086_s22  }
  0x36   :  { %s2029_s29 = scalar_lea.hbm %s2701_s11, 256 }
  0x37   :  { %p2030_p10 = scmp.ne.s32.totalorder %s2701_s11, %s2029_s29  ;;  %p2033_p11 = scmp.lt.u32.totalorder %s2029_s29, %s2701_s11 }
  0x39   :  { %p2035_p12 = pnand %p2033_p11, %p2030_p10 }
  0x3b   :  { %2038 = shalt.err (!%p2035_p12)
}
  0x3c   :  { %s2039_s20 = scalar_lea.vmem %s2187_s16, 256  ;;  %p2044_p0 = scmp.lt.s32.totalorder %s2187_s16, %s2187_s16 }
  0x3d   :  { %p2040_p13 = scmp.ne.s32.totalorder %s2187_s16, %s2039_s20  ;;  %p2045_p1 = scmp.lt.s32.totalorder %s2039_s20, %s2039_s20 }
  0x3f   :  { %p2046_p2 = por %p2045_p1, %p2044_p0 }
  0x41   :  { %p2047_p3 = pnand %p2046_p2, %p2040_p13 }
  0x43   :  { %2050 = shalt.err (!%p2047_p3)
}
  0x44   :  { %s2089_s8 = smov 64   ;;  %s2090_s4 = smov 4  }
  0x45   :  { %84 = dma.hbm_to_vmem [thread:$0]  %s2701_s11, 256, %s2187_s16, [#allocation9], %s2089_s8, %s2089_s8, %s2090_s4  }
  0x46   :  { %2073 = dma.done.wait [#allocation3], 256  }
  0x47   :  { %2074 = vsyncadd [#allocation3], 4294967040 }
  0x48   :  { %2075 = dma.done.wait [#allocation6], 288  }
  0x49   :  { %2076 = vsyncadd [#allocation6], 4294967008 }
  0x4a   :  { %2077 = dma.done.wait [#allocation9], 256  }
  0x4b   :  { %2078 = vsyncadd [#allocation9], 4294967040  ;;  %v2220_v0 = vld [vmem:[#allocation2] sm:$0xff]  ;;  %vm197_vm0 = vcmask 261120   ;;  %v2222_v1 = vld [vmem:[#allocation2 + $0x8] sm:$0xff]  ;;  %v2091_v7 = vmov 0.0   ;;  %v100_v27 = vlaneseq }
  0x4c   :  { %v195_v2 = vmul.f32 %v2220_v0, %v2220_v0  ;;  %v196_v3 = vmul.f32 %v2222_v1, %v2222_v1  ;;  %v1841_v6 = vld [vmem:[%s2692_s2] sm:$0xff]   ;;  %1703 = vmatprep.subr.bf16.mxu0 %v2091_v7  ;;  %vm2092_vm1 = vmmov 0   ;;  %v1842_v8 = vld [vmem:[%s2692_s2 + $0x8] sm:$0xff]   ;;  %s2093_s0 = smov 127   ;;  %v2257_v31 = vld [vmem:[#allocation7] sm:$0xff]  ;;  %s2096_s25 = smov [#allocation10]  }
  0x4d   :  { %1707 = vmatprep.mubr.msk.bf16.mxu0 %vm2092_vm1, %v2091_v7  ;;  %1704 = vmatpush3.bf16.msra.mxu0 %v1841_v6  ;;  %v1575_v18 = vld [vmem:[%s2691_s1] ss:$0 sm:$0xff]  ;;  %v2250_v28 = vshrl.u32 %v100_v27, 7  ;;  %v2255_v30 = vand.u32 127, %v100_v27  ;;  %v2275_v39 = vld [vmem:[%s2697_s7 + $0x8] sm:$0xff]  ;;  %s1564_s18 = sshll.u32 %s2096_s25, 4  ;;  %s1565_s18 = int_to_ptr.vmem [resolvable:$true] %s1564_s18 }
  0x4e   :  { %v198_v4 = vsel %vm197_vm0, %v195_v2, 0.0  ;;  %v201_v5 = vsel %vm197_vm0, %v196_v3, 0.0  ;;  %1705 = vmatprep.subr.bf16.mxu0 %v2091_v7  ;;  %v2267_v36 = vld [vmem:[%s2697_s7] sm:$0xff]  ;;  %v2289_v45 = vld [vmem:[%s2699_s9 + $0x8] sm:$0xff]  ;;  %s2094_s7 = smov 96   ;;  %p2056_p5 = scmp.lt.s32.totalorder %s1565_s18, %s1565_s18 }
  0x4f   :  { %199 = vadd.xlane.f32.xlu0 %v198_v4  ;;  %v2253_v29 = vadd.s32 8, %v2250_v28  ;;  %v109_v33 = vshra.s32 %v2250_v28, 4  ;;  %v2262_v35 = vshra.s32 %v2255_v30, 3  ;;  %v2269_v37 = vld [vmem:[#allocation7 + $0x8] sm:$0xff]  ;;  %v103_v59 = vadd.s32 16, %v2250_v28 }
  0x50   :  { %v2284_v43 = vld [vmem:[%s2699_s9] sm:$0xff]  ;;  %v2313_v60 = vadd.s32 24, %v2250_v28  ;;  %v2316_v61 = vadd.s32 32, %v2250_v28  ;;  %v2319_v62 = vadd.s32 40, %v2250_v28  ;;  %v2330_v6 = vadd.s32 56, %v2250_v28 }
  0x51   :  { %1706 = vmatpush3.bf16.msra.mxu0 %v1842_v8  ;;  %v110_v34 = vshra.s32 %v2253_v29, 4  ;;  %vm120_vm2 = vcmp.eq.s32.totalorder %v109_v33, %v2262_v35  ;;  %v111_v63 = vshra.s32 %v103_v59, 4 }
  0x52   :  { %v2293_v49 = vsel %vm120_vm2, 1.0, %v2091_v7  ;;  %v112_v2 = vshra.s32 %v2313_v60, 4  ;;  %v113_v3 = vshra.s32 %v2316_v61, 4  ;;  %v114_v4 = vshra.s32 %v2319_v62, 4 }
  0x53   :  { %202 = vadd.xlane.f32.xlu0 %v201_v5  ;;  %vm121_vm3 = vcmp.eq.s32.totalorder %v110_v34, %v2262_v35  ;;  %v2325_v5 = vadd.s32 48, %v2250_v28  ;;  %vm122_vm4 = vcmp.eq.s32.totalorder %v111_v63, %v2262_v35  ;;  %v143_v33 = vand.u32 15, %v2313_v60 }
  0x54   :  { %v2296_v50 = vsel %vm121_vm3, 1.0, %v2091_v7  ;;  %vm123_vm5 = vcmp.eq.s32.totalorder %v112_v2, %v2262_v35  ;;  %vm124_vm6 = vcmp.eq.s32.totalorder %v113_v3, %v2262_v35  ;;  %vm125_vm7 = vcmp.eq.s32.totalorder %v114_v4, %v2262_v35 }
  0x55   :  { %v2302_v56 = vpack.c.bf16 %v2296_v50, %v2293_v49 }
  0xdc   :  { %v200_v9 = vpop.xlane.xlu0 %199 }
  0xdd   :  { %v205_v10 = vmul.f32 0.03125, %v200_v9  ;;  %v2335_v9 = vsel %vm122_vm4, 1.0, %v2091_v7 }
  0xdf   :  { %v207_v11 = vadd.f32 1e-06, %v205_v10  ;;  %v2338_v10 = vsel %vm123_vm5, 1.0, %v2091_v7 }
  0xe0   :  { %v203_v12 = vpop.xlane.xlu0 %202 }
  0xe1   :  { %1863 = vrsqrt.f32 %v207_v11  ;;  %v206_v13 = vmul.f32 0.03125, %v203_v12  ;;  %v115_v11 = vshra.s32 %v2325_v5, 4 }
  0xe3   :  { %v208_v14 = vadd.f32 1e-06, %v206_v13  ;;  %v2344_v13 = vsel %vm124_vm6, 1.0, %v2091_v7  ;;  %vm126_vm8 = vcmp.eq.s32.totalorder %v115_v11, %v2262_v35  ;;  %vm167_vm6 = vcmp.le.s32.totalorder %v2255_v30, %v143_v33 }
  0xe5   :  { %1865 = vrsqrt.f32 %v208_v14  ;;  %v2347_v14 = vsel %vm125_vm7, 1.0, %v2091_v7  ;;  %vm388_vm7 = vcmask 130048  }
  0xeb   :  { %v1864_v15 = vpop.eup %1863 }
  0xec   :  { %v211_v16 = vmul.f32 %v1864_v15, %v2220_v0  ;;  %v116_v15 = vshra.s32 %v2330_v6, 4 }
  0xee   :  { %v219_v20 = vmul.f32 %v1575_v18, %v211_v16  ;;  %v2352_v16 = vpack.c.bf16 %v2338_v10, %v2335_v9  ;;  %vm127_vm9 = vcmp.eq.s32.totalorder %v116_v15, %v2262_v35 }
  0xef   :  { %v1866_v17 = vpop.eup %1865 }
  0xf0   :  { %v212_v19 = vmul.f32 %v1866_v17, %v2222_v1  ;;  %v2357_v17 = vpack.c.bf16 %v2347_v14, %v2344_v13 }
  0xf2   :  { %v220_v21 = vmul.f32 %v1575_v18, %v212_v19 }
  0xf4   :  { %v221_v22 = vpack.c.bf16 %v220_v21, %v219_v20  ;;  %v2366_v20 = vsel %vm126_vm8, 1.0, %v2091_v7  ;;  %v2369_v21 = vsel %vm127_vm9, 1.0, %v2091_v7 }
  0xf6   :  { %1708 = vmatmul.mubr.msk.bf16.vlgmr.msra.gmra.mrb[0].mxu0 %vm197_vm0, %v221_v22  ;;  %v2375_v22 = vpack.c.bf16 %v2369_v21, %v2366_v20 }
 0x1c9   :  { %v275_v23 = vpop.f32.mrb[0].mxu0 }
 0x1ca   :  { %292 = vrot.lane.b32.xlu0 %v275_v23, %s2093_s0  ;;  %284 = vrot.lane.b32.xlu1 %v275_v23, %s2083_s14  ;;  %v1709_v24 = vpop.f32.mrb[1].mxu0  ;;  %v282_v41 = vmul.f32 %v275_v23, %v2267_v36 }
 0x1cb   :  { %v278_v25 = vpop.f32.mrb[2].mxu0  ;;  %v140_v24 = vand.u32 15, %v2250_v28  ;;  %v145_v28 = vand.u32 15, %v2319_v62 }
 0x1cc   :  { %v1710_v26 = vpop.f32.mrb[3].mxu0  ;;  %v283_v46 = vmul.f32 %v278_v25, %v2275_v39 }
 0x1cd   :  { %v141_v26 = vand.u32 15, %v2253_v29  ;;  %v148_v27 = vshra.s32 %v140_v24, 3  ;;  %vm164_vm11 = vcmp.le.s32.totalorder %v2255_v30, %v140_v24  ;;  %v147_v29 = vand.u32 15, %v2330_v6 }
 0x1ce   :  { %286 = vrot.lane.b32.xlu1 %v278_v25, %s2083_s14 }
 0x1cf   :  { %v149_v34 = vshra.s32 %v141_v26, 3  ;;  %vm156_vm10 = vcmp.eq.s32.totalorder %v148_v27, %v2262_v35  ;;  %vm165_vm15 = vcmp.le.s32.totalorder %v2255_v30, %v141_v26 }
 0x1d0   :  { %vm172_vm2 = vmand %vm156_vm10, %vm164_vm11 }
 0x1d1   :  { %vm157_vm14 = vcmp.eq.s32.totalorder %v149_v34, %v2262_v35 }
 0x1d2   :  { %294 = vrot.lane.b32.xlu1 %v278_v25, %s2093_s0  ;;  %v142_v25 = vand.u32 15, %v103_v59  ;;  %vm173_vm5 = vmand %vm157_vm14, %vm165_vm15  ;;  %vm171_vm15 = vcmp.le.s32.totalorder %v2255_v30, %v147_v29 }
 0x1d4   :  { %vm166_vm13 = vcmp.le.s32.totalorder %v2255_v30, %v142_v25 }
 0x23c   :  { %v285_v32 = vpop.permute.xlu1 %284  ;;  %v293_v44 = vpop.permute.xlu0 %292 }
 0x23d   :  { %v288_v38 = vmul.f32 %v285_v32, %v2257_v31  ;;  %v296_v51 = vmul.f32 %v293_v44, %v2284_v43  ;;  %v150_v32 = vshra.s32 %v142_v25, 3 }
 0x23f   :  { %v290_v47 = vadd.f32 %v288_v38, %v282_v41  ;;  %vm158_vm12 = vcmp.eq.s32.totalorder %v150_v32, %v2262_v35  ;;  %v151_v38 = vshra.s32 %v143_v33, 3 }
 0x240   :  { %v287_v40 = vpop.permute.xlu1 %286  ;;  %vm174_vm3 = vmand %vm158_vm12, %vm166_vm13  ;;  %vm169_vm12 = vcmp.le.s32.totalorder %v2255_v30, %v145_v28 }
 0x241   :  { %v289_v42 = vmul.f32 %v287_v40, %v2269_v37  ;;  %v298_v54 = vadd.f32 %v296_v51, %v290_v47  ;;  %v144_v40 = vand.u32 15, %v2316_v61  ;;  %vm159_vm4 = vcmp.eq.s32.totalorder %v151_v38, %v2262_v35 }
 0x242   :  { %v153_v47 = vshra.s32 %v145_v28, 3  ;;  %vm175_vm8 = vmand %vm159_vm4, %vm167_vm6 }
 0x243   :  { %v291_v52 = vadd.f32 %v289_v42, %v283_v46  ;;  %v152_v41 = vshra.s32 %v144_v40, 3  ;;  %v2095_v42 = vmov -1e+30   ;;  %v146_v46 = vand.u32 15, %v2325_v5 }
 0x244   :  { %v295_v48 = vpop.permute.xlu1 %294  ;;  %v2395_v44 = vsel %vm172_vm2, 0.0, %v2095_v42  ;;  %v2399_v51 = vsel %vm174_vm3, 0.0, %v2095_v42  ;;  %vm168_vm10 = vcmp.le.s32.totalorder %v2255_v30, %v144_v40  ;;  %vm161_vm11 = vcmp.eq.s32.totalorder %v153_v47, %v2262_v35 }
 0x245   :  { %v297_v53 = vmul.f32 %v295_v48, %v2289_v45  ;;  %vm160_vm9 = vcmp.eq.s32.totalorder %v152_v41, %v2262_v35  ;;  %v154_v60 = vshra.s32 %v146_v46, 3  ;;  %v2413_v2 = vsel %vm175_vm8, 0.0, %v2095_v42  ;;  %vm177_vm2 = vmand %vm161_vm11, %vm169_vm12 }
 0x246   :  { %vm176_vm13 = vmand %vm160_vm9, %vm168_vm10  ;;  %vm170_vm4 = vcmp.le.s32.totalorder %v2255_v30, %v146_v46  ;;  %vm781_vm8 = vcmask 523264  }
 0x247   :  { %v299_v55 = vadd.f32 %v297_v53, %v291_v52  ;;  %v2401_v53 = vsel %vm173_vm5, 0.0, %v2095_v42  ;;  %vm162_vm3 = vcmp.eq.s32.totalorder %v154_v60, %v2262_v35 }
 0x248   :  { %vm178_vm6 = vmand %vm162_vm3, %vm170_vm4 }
 0x249   :  { %v2304_v57 = vpack.c.bf16 %v299_v55, %v298_v54  ;;  %v155_v54 = vshra.s32 %v147_v29, 3  ;;  %v2431_v24 = vsel %vm178_vm6, 0.0, %v2095_v42 }
 0x24b   :  { %306 = vrot.lane.b32.xlu1 %v2304_v57, %s2094_s7  ;;  %v301_v58 = vmul.bf16 %v2304_v57, %v2302_v56  ;;  %v302_v18 = vmul.bf16 %v2304_v57, %v2352_v16  ;;  %v303_v19 = vmul.bf16 %v2304_v57, %v2357_v17  ;;  %v304_v23 = vmul.bf16 %v2304_v57, %v2375_v22 }
 0x24c   :  { %vm163_vm14 = vcmp.eq.s32.totalorder %v155_v54, %v2262_v35 }
 0x24d   :  { %1713 = vmatprep.mubr.msk.bf16.mxu1 %vm197_vm0, %v301_v58  ;;  %vm179_vm5 = vmand %vm163_vm14, %vm171_vm15 }
 0x2bd   :  { %v307_v8 = vpop.permute.xlu1 %306 }
 0x2be   :  { %1823 = vmatprep.subr.msk.bf16.mxu1 %vm197_vm0, %v307_v8  ;;  %v321_v12 = vsel %vm197_vm0, %v307_v8, 0  ;;  %v2422_v8 = vsel %vm176_vm13, 0.0, %v2095_v42 }
 0x2bf   :  { %1712 = vmatpush3.bf16.xpose.msra.mxu1 %v321_v12  ;;  %v2424_v12 = vsel %vm177_vm2, 0.0, %v2095_v42 }
 0x2c0   :  { %1731 = vmatprep.subr.bf16.mxu1 %v2091_v7 }
 0x2c6   :  { %1714 = vmatmul.mubr.msk.bf16.vlgmr.msra.gmra.mrb[0].mxu1 %vm197_vm0, %v302_v18  ;;  %v2426_v18 = vsel %vm179_vm5, 0.0, %v2095_v42 }
 0x2c7   :  { %1717 = vmatprep.mubr.msk.bf16.mxu1 %vm197_vm0, %v303_v19 }
 0x2ce   :  { %1718 = vmatmul.mubr.msk.bf16.gmra.mrb[4].mxu1 %vm197_vm0, %v304_v23 }
 0x2cf   :  { %1735 = vmatprep.mubr.msk.bf16.mxu1 %vm2092_vm1, %v2091_v7 }
 0x399   :  { %v1715_v48 = vpop.f32.mrb[0].mxu1 }
 0x39a   :  { %v357_v52 = vpop.f32.mrb[1].mxu1  ;;  %v366_v61 = vadd.f32 %v1715_v48, %v2399_v51 }
 0x39b   :  { %v358_v55 = vadd.f32 %v357_v52, %v2395_v44  ;;  %v1716_v58 = vpop.f32.mrb[2].mxu1 }
 0x39c   :  { %v360_v59 = vpop.f32.mrb[3].mxu1  ;;  %v369_v4 = vadd.f32 %v1716_v58, %v2413_v2  ;;  %v395_v6 = vsel %vm388_vm7, %v366_v61, -inf }
 0x39d   :  { %v361_v62 = vadd.f32 %v360_v59, %v2401_v53  ;;  %v389_v63 = vsel %vm388_vm7, %v358_v55, -inf }
 0x39e   :  { %390 = vmax.xlane.f32.xlu1 %v389_v63  ;;  %v398_v23 = vsel %vm388_vm7, %v369_v4, -inf }
 0x39f   :  { %v392_v3 = vsel %vm388_vm7, %v361_v62, -inf }
 0x3a0   :  { %393 = vmax.xlane.f32.xlu0 %v392_v3 }
 0x3a1   :  { %v1719_v5 = vpop.f32.mrb[4].mxu1 }
 0x3a2   :  { %v373_v11 = vpop.f32.mrb[5].mxu1  ;;  %396 = vmax.xlane.f32.xlu1 %v395_v6  ;;  %v382_v27 = vadd.f32 %v1719_v5, %v2431_v24 }
 0x3a3   :  { %v1720_v15 = vpop.f32.mrb[6].mxu1  ;;  %v374_v35 = vadd.f32 %v373_v11, %v2422_v8 }
 0x3a4   :  { %v376_v19 = vpop.f32.mrb[7].mxu1  ;;  %v385_v25 = vadd.f32 %v1720_v15, %v2426_v18  ;;  %v407_v34 = vsel %vm388_vm7, %v382_v27, -inf }
 0x3a5   :  { %v377_v30 = vadd.f32 %v376_v19, %v2424_v12  ;;  %v401_v32 = vsel %vm388_vm7, %v374_v35, -inf }
 0x3a6   :  { %399 = vmax.xlane.f32.xlu1 %v398_v23  ;;  %v410_v33 = vsel %vm388_vm7, %v385_v25, -inf }
 0x3a7   :  { %v404_v26 = vsel %vm388_vm7, %v377_v30, -inf }
 0x3a8   :  { %405 = vmax.xlane.f32.xlu0 %v404_v26 }
 0x3aa   :  { %402 = vmax.xlane.f32.xlu1 %v401_v32 }
 0x3ac   :  { %411 = vmax.xlane.f32.xlu0 %v410_v33 }
 0x3ae   :  { %408 = vmax.xlane.f32.xlu1 %v407_v34 }
 0x42b   :  { %v391_v38 = vpop.xlane.xlu1 %390 }
 0x42c   :  { %v413_v28 = vsub.f32 %v358_v55, %v391_v38 }
 0x42d   :  { %v394_v40 = vpop.xlane.xlu0 %393 }
 0x42e   :  { %v414_v29 = vsub.f32 %v361_v62, %v394_v40  ;;  %v421_v47 = vmul.f32 1.442695, %v413_v28 }
 0x42f   :  { %v397_v41 = vpop.xlane.xlu1 %396 }
 0x430   :  { %v423_v42 = vmul.f32 1.442695, %v414_v29  ;;  %v415_v46 = vsub.f32 %v366_v61, %v397_v41 }
 0x432   :  { %1867 = vpow2.f32 %v423_v42  ;;  %v425_v48 = vmul.f32 1.442695, %v415_v46 }
 0x433   :  { %v400_v52 = vpop.xlane.xlu1 %399 }
 0x434   :  { %1869 = vpow2.f32 %v425_v48  ;;  %v416_v54 = vsub.f32 %v369_v4, %v400_v52 }
 0x435   :  { %v406_v58 = vpop.xlane.xlu0 %405  ;;  %1871 = vpow2.f32 %v421_v47 }
 0x436   :  { %v427_v59 = vmul.f32 1.442695, %v416_v54  ;;  %v418_v60 = vsub.f32 %v377_v30, %v406_v58 }
 0x437   :  { %v403_v63 = vpop.xlane.xlu1 %402 }
 0x438   :  { %1873 = vpow2.f32 %v427_v59  ;;  %v431_v3 = vmul.f32 1.442695, %v418_v60  ;;  %v417_v55 = vsub.f32 %v374_v35, %v403_v63 }
 0x439   :  { %v412_v5 = vpop.xlane.xlu0 %411 }
 0x43a   :  { %1875 = vpow2.f32 %v431_v3  ;;  %v420_v62 = vsub.f32 %v385_v25, %v412_v5  ;;  %v429_v26 = vmul.f32 1.442695, %v417_v55 }
 0x43b   :  { %v409_v6 = vpop.xlane.xlu1 %408 }
 0x43c   :  { %v1868_v11 = vpop.eup %1867  ;;  %v435_v61 = vmul.f32 1.442695, %v420_v62  ;;  %v419_v15 = vsub.f32 %v382_v27, %v409_v6 }
 0x43d   :  { %v440_v19 = vsel %vm388_vm7, %v1868_v11, 0.0 }
 0x43e   :  { %v1870_v23 = vpop.eup %1869  ;;  %1877 = vpow2.f32 %v435_v61  ;;  %v433_v4 = vmul.f32 1.442695, %v419_v15  ;;  %441 = vadd.xlane.f32.xlu0 %v440_v19 }
 0x43f   :  { %v443_v30 = vsel %vm388_vm7, %v1870_v23, 0.0  ;;  %v1872_v32 = vpop.eup %1871 }
 0x440   :  { %1879 = vpow2.f32 %v433_v4  ;;  %444 = vadd.xlane.f32.xlu1 %v443_v30  ;;  %v437_v35 = vsel %vm388_vm7, %v1872_v32, 0.0 }
 0x441   :  { %1881 = vpow2.f32 %v429_v26 }
 0x442   :  { %v1874_v33 = vpop.eup %1873 }
 0x443   :  { %v446_v25 = vsel %vm388_vm7, %v1874_v33, 0.0 }
 0x444   :  { %v1876_v34 = vpop.eup %1875  ;;  %438 = vadd.xlane.f32.xlu1 %v437_v35  ;;  %447 = vadd.xlane.f32.xlu0 %v446_v25 }
 0x445   :  { %v452_v27 = vsel %vm388_vm7, %v1876_v34, 0.0 }
 0x448   :  { %v1878_v38 = vpop.eup %1877  ;;  %453 = vadd.xlane.f32.xlu0 %v452_v27 }
 0x449   :  { %v458_v28 = vsel %vm388_vm7, %v1878_v38, 0.0 }
 0x44a   :  { %v1880_v40 = vpop.eup %1879 }
 0x44b   :  { %v455_v29 = vsel %vm388_vm7, %v1880_v40, 0.0  ;;  %v1882_v41 = vpop.eup %1881 }
 0x44c   :  { %459 = vadd.xlane.f32.xlu0 %v458_v28  ;;  %456 = vadd.xlane.f32.xlu1 %v455_v29  ;;  %v449_v42 = vsel %vm388_vm7, %v1882_v41, 0.0 }
 0x450   :  { %450 = vadd.xlane.f32.xlu1 %v449_v42 }
 0x461   :  { %481 = vrot.lane.b32.xlu1 %v2304_v57, %s2089_s8 }
 0x4cb   :  { %v442_v46 = vpop.xlane.xlu0 %441 }
 0x4cc   :  { %1883 = vrcp.f32 %v442_v46 }
 0x4cd   :  { %v445_v47 = vpop.xlane.xlu1 %444 }
 0x4d1   :  { %v448_v48 = vpop.xlane.xlu0 %447  ;;  %v439_v52 = vpop.xlane.xlu1 %438 }
 0x4d2   :  { %1885 = vrcp.f32 %v448_v48 }
 0x4d3   :  { %1887 = vrcp.f32 %v439_v52 }
 0x4d4   :  { %1889 = vrcp.f32 %v445_v47 }
 0x4d5   :  { %v454_v54 = vpop.xlane.xlu0 %453 }
 0x4d6   :  { %v1884_v60 = vpop.eup %1883 }
 0x4d7   :  { %v470_v55 = vmul.f32 %v1884_v60, %v1868_v11 }
 0x4d9   :  { %v460_v58 = vpop.xlane.xlu0 %459  ;;  %v457_v59 = vpop.xlane.xlu1 %456 }
 0x4da   :  { %1891 = vrcp.f32 %v460_v58 }
 0x4db   :  { %1893 = vrcp.f32 %v457_v59 }
 0x4dc   :  { %v1886_v63 = vpop.eup %1885  ;;  %1895 = vrcp.f32 %v454_v54 }
 0x4dd   :  { %v1888_v3 = vpop.eup %1887  ;;  %v451_v5 = vpop.xlane.xlu1 %450  ;;  %v472_v6 = vmul.f32 %v1886_v63, %v1874_v33 }
 0x4de   :  { %1897 = vrcp.f32 %v451_v5  ;;  %v469_v57 = vmul.f32 %v1888_v3, %v1872_v32  ;;  %v1890_v62 = vpop.eup %1889 }
 0x4df   :  { %v471_v19 = vmul.f32 %v1890_v62, %v1870_v23  ;;  %v1843_v23 = vld [vmem:[%s2693_s3] sm:$0xff]  }
 0x4e0   :  { %v477_v61 = vpack.c.bf16 %v470_v55, %v469_v57  ;;  %1732 = vmatpush3.bf16.msra.mxu1 %v1843_v23 }
 0x4e1   :  { %v482_v15 = vpop.permute.xlu1 %481  ;;  %v478_v4 = vpack.c.bf16 %v472_v6, %v471_v19  ;;  %1733 = vmatprep.subr.bf16.mxu1 %v2091_v7 }
 0x4e2   :  { %1723 = vmatprep.mubr.msk.bf16.mxu0 %vm388_vm7, %v477_v61  ;;  %1721 = vmatprep.subr.bf16.mxu0 %v482_v15 }
 0x4e3   :  { %1722 = vmatpush3.bf16.msra.mxu0 %v482_v15 }
 0x4e4   :  { %v1892_v26 = vpop.eup %1891  ;;  %1739 = vmatprep.subr.bf16.mxu0 %v2091_v7 }
 0x4e5   :  { %v1894_v30 = vpop.eup %1893  ;;  %v476_v11 = vmul.f32 %v1892_v26, %v1878_v38 }
 0x4e6   :  { %v1896_v35 = vpop.eup %1895  ;;  %1724 = vmatmul.mubr.msk.bf16.vlgmr.msra.gmra.mrb[4].mxu0 %vm388_vm7, %v478_v4  ;;  %v475_v32 = vmul.f32 %v1894_v30, %v1880_v40 }
 0x4e7   :  { %v474_v33 = vmul.f32 %v1896_v35, %v1876_v34  ;;  %v1844_v34 = vld [vmem:[%s2693_s3 + $0x8] sm:$0xff]  }
 0x4e8   :  { %v1898_v25 = vpop.eup %1897  ;;  %v480_v29 = vpack.c.bf16 %v476_v11, %v475_v32  ;;  %1734 = vmatpush3.bf16.msra.mxu1 %v1844_v34 }
 0x4e9   :  { %v473_v27 = vmul.f32 %v1898_v25, %v1882_v41  ;;  %1747 = vmatprep.subr.bf16.mxu1 %v2091_v7 }
 0x4eb   :  { %v479_v28 = vpack.c.bf16 %v474_v33, %v473_v27 }
 0x4ed   :  { %1727 = vmatprep.mubr.msk.bf16.mxu0 %vm388_vm7, %v479_v28 }
 0x4ee   :  { %1728 = vmatmul.mubr.msk.bf16.gmra.mrb[8].mxu0 %vm388_vm7, %v480_v29 }
 0x4ef   :  { %1743 = vmatprep.mubr.msk.bf16.mxu0 %vm2092_vm1, %v2091_v7 }
 0x5b9   :  { %v1725_v38 = vpop.f32.mrb[4].mxu0 }
 0x5ba   :  { %v563_v40 = vmul.f32 %v1725_v38, %v2335_v9  ;;  %v530_v41 = vpop.f32.mrb[5].mxu0 }
 0x5bb   :  { %v561_v42 = vmul.f32 %v530_v41, %v2293_v49  ;;  %v1726_v46 = vpop.f32.mrb[6].mxu0 }
 0x5bc   :  { %v564_v47 = vmul.f32 %v1726_v46, %v2338_v10  ;;  %v533_v48 = vpop.f32.mrb[7].mxu0 }
 0x5bd   :  { %v569_v52 = vadd.f32 %v563_v40, %v561_v42  ;;  %v562_v54 = vmul.f32 %v533_v48, %v2296_v50 }
 0x5bf   :  { %v570_v58 = vadd.f32 %v564_v47, %v562_v54 }
 0x5c1   :  { %v1729_v59 = vpop.f32.mrb[8].mxu0 }
 0x5c2   :  { %v546_v60 = vpop.f32.mrb[9].mxu0  ;;  %v567_v57 = vmul.f32 %v1729_v59, %v2366_v20 }
 0x5c3   :  { %v565_v63 = vmul.f32 %v546_v60, %v2344_v13  ;;  %v1730_v3 = vpop.f32.mrb[10].mxu0 }
 0x5c4   :  { %v549_v5 = vpop.f32.mrb[11].mxu0  ;;  %v568_v61 = vmul.f32 %v1730_v3, %v2369_v21  ;;  %v1848_v3 = vld [vmem:[%s2696_s6 + $0x8] sm:$0xff]  }
 0x5c5   :  { %v571_v55 = vadd.f32 %v569_v52, %v565_v63  ;;  %v566_v62 = vmul.f32 %v549_v5, %v2347_v14  ;;  %v1590_v52 = vld [vmem:[#allocation5] ss:$0 sm:$0xff]  ;;  %v1847_v63 = vld [vmem:[%s2696_s6] sm:$0xff]  }
 0x5c6   :  { %v1849_v5 = vld [vmem:[%s2696_s6 + $0x10] sm:$0xff]  }
 0x5c7   :  { %v573_v6 = vadd.f32 %v571_v55, %v567_v57  ;;  %v572_v15 = vadd.f32 %v570_v58, %v566_v62  ;;  %v1850_v57 = vld [vmem:[%s2696_s6 + $0x18] sm:$0xff]  }
 0x5c9   :  { %v574_v19 = vadd.f32 %v572_v15, %v568_v61 }
 0x5cb   :  { %v575_v26 = vpack.c.bf16 %v574_v19, %v573_v6 }
 0x5cd   :  { %1736 = vmatmul.mubr.msk.bf16.vlgmr.msra.gmra.mrb[8].mxu1 %vm197_vm0, %v575_v26 }
 0x5ce   :  { %1755 = vmatprep.mubr.msk.bf16.mxu1 %vm2092_vm1, %v2091_v7  ;;  %1748 = vmatpush3.bf16.msra.mxu1 %v1847_v63 }
 0x5cf   :  { %1749 = vmatprep.subr.bf16.mxu1 %v2091_v7 }
 0x5d2   :  { %1750 = vmatpush3.bf16.msra.mxu1 %v1848_v3 }
 0x5d3   :  { %1751 = vmatprep.subr.bf16.mxu1 %v2091_v7 }
 0x5d6   :  { %1752 = vmatpush3.bf16.msra.mxu1 %v1849_v5 }
 0x5d7   :  { %1753 = vmatprep.subr.bf16.mxu1 %v2091_v7 }
 0x5da   :  { %1754 = vmatpush3.bf16.msra.mxu1 %v1850_v57 }
 0x6a0   :  { %v629_v4 = vpop.f32.mrb[8].mxu1 }
 0x6a1   :  { %v2476_v30 = vadd.f32 %v629_v4, %v2220_v0  ;;  %v1737_v35 = vpop.f32.mrb[9].mxu1  ;;  %v1845_v0 = vld [vmem:[%s2695_s5] sm:$0xff]  }
 0x6a2   :  { %v632_v25 = vpop.f32.mrb[10].mxu1  ;;  %1740 = vmatpush3.bf16.msra.mxu0 %v1845_v0 }
 0x6a3   :  { %v2479_v32 = vadd.f32 %v632_v25, %v2222_v1  ;;  %v1738_v11 = vpop.f32.mrb[11].mxu1  ;;  %v639_v27 = vmul.f32 %v2476_v30, %v2476_v30  ;;  %1741 = vmatprep.subr.bf16.mxu0 %v2091_v7  ;;  %v1846_v1 = vld [vmem:[%s2695_s5 + $0x8] sm:$0xff]  }
 0x6a5   :  { %v641_v33 = vsel %vm197_vm0, %v639_v27, 0.0  ;;  %v640_v28 = vmul.f32 %v2479_v32, %v2479_v32 }
 0x6a6   :  { %642 = vadd.xlane.f32.xlu0 %v641_v33  ;;  %1742 = vmatpush3.bf16.msra.mxu0 %v1846_v1 }
 0x6a7   :  { %v644_v29 = vsel %vm197_vm0, %v640_v28, 0.0  ;;  %1759 = vmatprep.subr.bf16.mxu0 %v2091_v7 }
 0x6aa   :  { %645 = vadd.xlane.f32.xlu0 %v644_v29 }
 0x733   :  { %v643_v23 = vpop.xlane.xlu0 %642 }
 0x734   :  { %v647_v34 = vmul.f32 0.03125, %v643_v23 }
 0x736   :  { %v649_v38 = vadd.f32 1e-06, %v647_v34 }
 0x737   :  { %v646_v40 = vpop.xlane.xlu0 %645 }
 0x738   :  { %1899 = vrsqrt.f32 %v649_v38  ;;  %v648_v41 = vmul.f32 0.03125, %v646_v40 }
 0x73a   :  { %v650_v42 = vadd.f32 1e-06, %v648_v41 }
 0x73c   :  { %1901 = vrsqrt.f32 %v650_v42 }
 0x742   :  { %v1900_v46 = vpop.eup %1899 }
 0x743   :  { %v653_v47 = vmul.f32 %v1900_v46, %v2476_v30 }
 0x745   :  { %v661_v58 = vmul.f32 %v1590_v52, %v653_v47 }
 0x746   :  { %v1902_v48 = vpop.eup %1901 }
 0x747   :  { %v654_v54 = vmul.f32 %v1902_v48, %v2479_v32 }
 0x749   :  { %v662_v59 = vmul.f32 %v1590_v52, %v654_v54 }
 0x74b   :  { %v663_v60 = vpack.c.bf16 %v662_v59, %v661_v58 }
 0x74d   :  { %1744 = vmatmul.mubr.msk.bf16.vlgmr.msra.gmra.mrb[12].mxu0 %vm197_vm0, %v663_v60 }
 0x74e   :  { %1763 = vmatprep.mubr.msk.bf16.mxu0 %vm2092_vm1, %v2091_v7 }
 0x820   :  { %v717_v55 = vpop.f32.mrb[12].mxu0 }
 0x821   :  { %740 = vrot.lane.b32.xlu0 %v717_v55, %s2089_s8  ;;  %v1745_v62 = vpop.f32.mrb[13].mxu0  ;;  %v1594_v15 = vmul.f32 -1.442695, %v717_v55 }
 0x822   :  { %v720_v6 = vpop.f32.mrb[14].mxu0 }
 0x823   :  { %742 = vrot.lane.b32.xlu1 %v720_v6, %s2089_s8  ;;  %v1746_v61 = vpop.f32.mrb[15].mxu0  ;;  %v1595_v19 = vmul.f32 -1.442695, %v720_v6  ;;  %1903 = vpow2.f32 %v1594_v15 }
 0x824   :  { %v1602_v61 = vld [vmem:[%s2691_s1 + $0x1] ss:$0 sm:$0xff] }
 0x825   :  { %1905 = vpow2.f32 %v1595_v19 }
 0x82d   :  { %v1904_v26 = vpop.eup %1903 }
 0x82e   :  { %v730_v35 = vadd.f32 1.0, %v1904_v26 }
 0x82f   :  { %v1906_v4 = vpop.eup %1905 }
 0x830   :  { %v731_v25 = vadd.f32 1.0, %v1906_v4  ;;  %1907 = vrcp.f32 %v730_v35 }
 0x832   :  { %1909 = vrcp.f32 %v731_v25 }
 0x83a   :  { %v1908_v11 = vpop.eup %1907 }
 0x83b   :  { %v736_v28 = vmul.f32 %v1908_v11, %v717_v55 }
 0x83c   :  { %v1910_v27 = vpop.eup %1909 }
 0x83d   :  { %v737_v29 = vmul.f32 %v1910_v27, %v720_v6 }
 0x893   :  { %v741_v33 = vpop.permute.xlu0 %740 }
 0x894   :  { %v746_v1 = vmul.f32 %v741_v33, %v736_v28 }
 0x895   :  { %v743_v0 = vpop.permute.xlu1 %742 }
 0x896   :  { %v747_v23 = vmul.f32 %v743_v0, %v737_v29 }
 0x898   :  { %v748_v34 = vpack.c.bf16 %v747_v23, %v746_v1 }
 0x89a   :  { %1756 = vmatmul.mubr.msk.bf16.vlgmr.msra.gmra.mrb[12].mxu1 %vm781_vm8, %v748_v34 }
 0x96d   :  { %v819_v38 = vpop.f32.mrb[12].mxu1 }
 0x96e   :  { %v2519_v40 = vadd.f32 %v819_v38, %v2476_v30  ;;  %v1757_v41 = vpop.f32.mrb[13].mxu1  ;;  %v1851_v30 = vld [vmem:[%s2692_s2 + $0x10] sm:$0xff]  }
 0x96f   :  { %v822_v42 = vpop.f32.mrb[14].mxu1  ;;  %1760 = vmatpush3.bf16.msra.mxu0 %v1851_v30 }
 0x970   :  { %v2522_v46 = vadd.f32 %v822_v42, %v2479_v32  ;;  %v1758_v47 = vpop.f32.mrb[15].mxu1  ;;  %v830_v48 = vmul.f32 %v2519_v40, %v2519_v40  ;;  %v1852_v32 = vld [vmem:[%s2692_s2 + $0x18] sm:$0xff]   ;;  %1761 = vmatprep.subr.bf16.mxu0 %v2091_v7 }
 0x972   :  { %v832_v52 = vsel %vm197_vm0, %v830_v48, 0.0  ;;  %v831_v54 = vmul.f32 %v2522_v46, %v2522_v46 }
 0x973   :  { %833 = vadd.xlane.f32.xlu1 %v832_v52  ;;  %1762 = vmatpush3.bf16.msra.mxu0 %v1852_v32 }
 0x974   :  { %v835_v58 = vsel %vm197_vm0, %v831_v54, 0.0 }
 0x975   :  { %836 = vadd.xlane.f32.xlu0 %v835_v58 }
 0xa00   :  { %v834_v59 = vpop.xlane.xlu1 %833 }
 0xa01   :  { %v838_v60 = vmul.f32 0.03125, %v834_v59 }
 0xa02   :  { %v837_v63 = vpop.xlane.xlu0 %836 }
 0xa03   :  { %v840_v3 = vadd.f32 1e-06, %v838_v60  ;;  %v839_v5 = vmul.f32 0.03125, %v837_v63 }
 0xa05   :  { %1911 = vrsqrt.f32 %v840_v3  ;;  %v841_v57 = vadd.f32 1e-06, %v839_v5 }
 0xa07   :  { %1913 = vrsqrt.f32 %v841_v57 }
 0xa0f   :  { %v1912_v55 = vpop.eup %1911 }
 0xa10   :  { %v844_v62 = vmul.f32 %v1912_v55, %v2519_v40 }
 0xa11   :  { %v1914_v6 = vpop.eup %1913 }
 0xa12   :  { %v845_v15 = vmul.f32 %v1914_v6, %v2522_v46  ;;  %v852_v19 = vmul.f32 %v1602_v61, %v844_v62 }
 0xa14   :  { %v853_v26 = vmul.f32 %v1602_v61, %v845_v15 }
 0xa16   :  { %v854_v4 = vpack.c.bf16 %v853_v26, %v852_v19 }
 0xa18   :  { %1764 = vmatmul.mubr.msk.bf16.vlgmr.msra.gmra.mrb[16].mxu0 %vm197_vm0, %v854_v4 }
 0xaeb   :  { %v909_v35 = vpop.f32.mrb[16].mxu0 }
 0xaec   :  { %918 = vrot.lane.b32.xlu1 %v909_v35, %s2083_s14  ;;  %v1765_v25 = vpop.f32.mrb[17].mxu0  ;;  %v916_v23 = vmul.f32 %v909_v35, %v2267_v36 }
 0xaed   :  { %v912_v11 = vpop.f32.mrb[18].mxu0 }
 0xaee   :  { %920 = vrot.lane.b32.xlu0 %v912_v11, %s2083_s14  ;;  %v1766_v27 = vpop.f32.mrb[19].mxu0  ;;  %v917_v34 = vmul.f32 %v912_v11, %v2275_v39 }
 0xaf0   :  { %926 = vrot.lane.b32.xlu1 %v909_v35, %s2093_s0 }
 0xaf4   :  { %928 = vrot.lane.b32.xlu1 %v912_v11, %s2093_s0 }
 0xb5e   :  { %v919_v33 = vpop.permute.xlu1 %918 }
 0xb5f   :  { %v922_v0 = vmul.f32 %v919_v33, %v2257_v31 }
 0xb60   :  { %v921_v28 = vpop.permute.xlu0 %920 }
 0xb61   :  { %v923_v1 = vmul.f32 %v921_v28, %v2269_v37  ;;  %v924_v42 = vadd.f32 %v922_v0, %v916_v23 }
 0xb62   :  { %v927_v29 = vpop.permute.xlu1 %926 }
 0xb63   :  { %v930_v38 = vmul.f32 %v927_v29, %v2284_v43  ;;  %v925_v47 = vadd.f32 %v923_v1, %v917_v34 }
 0xb65   :  { %v932_v52 = vadd.f32 %v930_v38, %v924_v42 }
 0xb66   :  { %v929_v41 = vpop.permute.xlu1 %928 }
 0xb67   :  { %v931_v48 = vmul.f32 %v929_v41, %v2289_v45 }
 0xb69   :  { %v933_v54 = vadd.f32 %v931_v48, %v925_v47 }
 0xb6b   :  { %v2553_v58 = vpack.c.bf16 %v933_v54, %v932_v52 }
 0xb6d   :  { %940 = vrot.lane.b32.xlu1 %v2553_v58, %s2094_s7  ;;  %v935_v31 = vmul.bf16 %v2553_v58, %v2302_v56  ;;  %v936_v39 = vmul.bf16 %v2553_v58, %v2352_v16  ;;  %v937_v43 = vmul.bf16 %v2553_v58, %v2357_v17  ;;  %v938_v45 = vmul.bf16 %v2553_v58, %v2375_v22 }
 0xb6f   :  { %1769 = vmatprep.mubr.msk.bf16.mxu0 %vm197_vm0, %v935_v31 }
 0xbdf   :  { %v941_v36 = vpop.permute.xlu1 %940 }
 0xbe0   :  { %v955_v37 = vsel %vm197_vm0, %v941_v36, 0  ;;  %1824 = vmatprep.subr.msk.bf16.mxu0 %vm197_vm0, %v941_v36 }
 0xbe1   :  { %1768 = vmatpush3.bf16.xpose.msra.mxu0 %v955_v37 }
 0xbe2   :  { %1787 = vmatprep.subr.bf16.mxu0 %v2091_v7 }
 0xbe8   :  { %1770 = vmatmul.mubr.msk.bf16.vlgmr.msra.gmra.mrb[20].mxu0 %vm197_vm0, %v936_v39 }
 0xbe9   :  { %1773 = vmatprep.mubr.msk.bf16.mxu0 %vm197_vm0, %v937_v43 }
 0xbf0   :  { %1774 = vmatmul.mubr.msk.bf16.gmra.mrb[24].mxu0 %vm197_vm0, %v938_v45 }
 0xbf1   :  { %1791 = vmatprep.mubr.msk.bf16.mxu0 %vm2092_vm1, %v2091_v7 }
 0xcbb   :  { %v1771_v56 = vpop.f32.mrb[20].mxu0 }
 0xcbc   :  { %v991_v30 = vpop.f32.mrb[21].mxu0  ;;  %v1000_v17 = vadd.f32 %v1771_v56, %v2399_v51 }
 0xcbd   :  { %v992_v32 = vadd.f32 %v991_v30, %v2395_v44  ;;  %v1772_v16 = vpop.f32.mrb[22].mxu0 }
 0xcbe   :  { %v994_v59 = vpop.f32.mrb[23].mxu0  ;;  %v1003_v3 = vadd.f32 %v1772_v16, %v2413_v2  ;;  %v1028_v57 = vsel %vm388_vm7, %v1000_v17, -inf }
 0xcbf   :  { %v995_v60 = vadd.f32 %v994_v59, %v2401_v53  ;;  %v1022_v63 = vsel %vm388_vm7, %v992_v32, -inf }
 0xcc0   :  { %1023 = vmax.xlane.f32.xlu0 %v1022_v63  ;;  %v1031_v15 = vsel %vm388_vm7, %v1003_v3, -inf }
 0xcc1   :  { %v1025_v22 = vsel %vm388_vm7, %v995_v60, -inf }
 0xcc2   :  { %1026 = vmax.xlane.f32.xlu1 %v1025_v22 }
 0xcc3   :  { %v1775_v5 = vpop.f32.mrb[24].mxu0 }
 0xcc4   :  { %v1007_v55 = vpop.f32.mrb[25].mxu0  ;;  %1029 = vmax.xlane.f32.xlu0 %v1028_v57  ;;  %v1016_v51 = vadd.f32 %v1775_v5, %v2431_v24 }
 0xcc5   :  { %v1008_v44 = vadd.f32 %v1007_v55, %v2422_v8  ;;  %v1776_v62 = vpop.f32.mrb[26].mxu0 }
 0xcc6   :  { %v1010_v6 = vpop.f32.mrb[27].mxu0  ;;  %v1019_v2 = vadd.f32 %v1776_v62, %v2426_v18  ;;  %v1040_v19 = vsel %vm388_vm7, %v1016_v51, -inf }
 0xcc7   :  { %v1011_v53 = vadd.f32 %v1010_v6, %v2424_v12  ;;  %v1034_v61 = vsel %vm388_vm7, %v1008_v44, -inf }
 0xcc8   :  { %1035 = vmax.xlane.f32.xlu1 %v1034_v61  ;;  %1032 = vmax.xlane.f32.xlu0 %v1031_v15  ;;  %v1043_v8 = vsel %vm388_vm7, %v1019_v2, -inf }
 0xcc9   :  { %v1037_v26 = vsel %vm388_vm7, %v1011_v53, -inf }
 0xccc   :  { %1041 = vmax.xlane.f32.xlu1 %v1040_v19  ;;  %1038 = vmax.xlane.f32.xlu0 %v1037_v26 }
 0xcd0   :  { %1044 = vmax.xlane.f32.xlu0 %v1043_v8 }
 0xd4d   :  { %v1024_v24 = vpop.xlane.xlu0 %1023 }
 0xd4e   :  { %v1046_v12 = vsub.f32 %v992_v32, %v1024_v24 }
 0xd4f   :  { %v1027_v4 = vpop.xlane.xlu1 %1026 }
 0xd50   :  { %v1047_v35 = vsub.f32 %v995_v60, %v1027_v4  ;;  %v1054_v33 = vmul.f32 1.442695, %v1046_v12 }
 0xd51   :  { %v1030_v25 = vpop.xlane.xlu0 %1029 }
 0xd52   :  { %v1056_v11 = vmul.f32 1.442695, %v1047_v35  ;;  %v1048_v27 = vsub.f32 %v1000_v17, %v1030_v25 }
 0xd54   :  { %1915 = vpow2.f32 %v1056_v11  ;;  %v1058_v28 = vmul.f32 1.442695, %v1048_v27 }
 0xd55   :  { %v1036_v18 = vpop.xlane.xlu1 %1035  ;;  %v1033_v29 = vpop.xlane.xlu0 %1032 }
 0xd56   :  { %1917 = vpow2.f32 %v1058_v28  ;;  %v1049_v0 = vsub.f32 %v1003_v3, %v1033_v29  ;;  %v1050_v1 = vsub.f32 %v1008_v44, %v1036_v18 }
 0xd57   :  { %1919 = vpow2.f32 %v1054_v33 }
 0xd58   :  { %v1060_v23 = vmul.f32 1.442695, %v1049_v0  ;;  %v1062_v47 = vmul.f32 1.442695, %v1050_v1 }
 0xd59   :  { %v1042_v34 = vpop.xlane.xlu1 %1041  ;;  %v1039_v38 = vpop.xlane.xlu0 %1038 }
 0xd5a   :  { %v1052_v41 = vsub.f32 %v1016_v51, %v1042_v34  ;;  %v1051_v42 = vsub.f32 %v1011_v53, %v1039_v38  ;;  %1921 = vpow2.f32 %v1060_v23 }
 0xd5c   :  { %v1066_v48 = vmul.f32 1.442695, %v1052_v41  ;;  %v1064_v52 = vmul.f32 1.442695, %v1051_v42  ;;  %v1853_v41 = vld [vmem:[%s2693_s3 + $0x10] sm:$0xff]   ;;  %v1854_v42 = vld [vmem:[%s2693_s3 + $0x18] sm:$0xff]  }
 0xd5d   :  { %v1045_v54 = vpop.xlane.xlu0 %1044  ;;  %1788 = vmatpush3.bf16.msra.mxu0 %v1853_v41 }
 0xd5e   :  { %v1916_v31 = vpop.eup %1915  ;;  %1923 = vpow2.f32 %v1066_v48  ;;  %v1053_v36 = vsub.f32 %v1019_v2, %v1045_v54  ;;  %1789 = vmatprep.subr.bf16.mxu0 %v2091_v7 }
 0xd5f   :  { %1925 = vpow2.f32 %v1064_v52  ;;  %v1073_v37 = vsel %vm388_vm7, %v1916_v31, 0.0 }
 0xd60   :  { %v1918_v39 = vpop.eup %1917  ;;  %1927 = vpow2.f32 %v1062_v47  ;;  %v1068_v43 = vmul.f32 1.442695, %v1053_v36  ;;  %1074 = vadd.xlane.f32.xlu0 %v1073_v37 }
 0xd61   :  { %v1076_v45 = vsel %vm388_vm7, %v1918_v39, 0.0  ;;  %v1920_v56 = vpop.eup %1919  ;;  %1790 = vmatpush3.bf16.msra.mxu0 %v1854_v42 }
 0xd62   :  { %1929 = vpow2.f32 %v1068_v43  ;;  %1077 = vadd.xlane.f32.xlu1 %v1076_v45  ;;  %v1070_v32 = vsel %vm388_vm7, %v1920_v56, 0.0  ;;  %1803 = vmatprep.subr.bf16.mxu0 %v2091_v7 }
 0xd64   :  { %v1922_v30 = vpop.eup %1921 }
 0xd65   :  { %v1079_v16 = vsel %vm388_vm7, %v1922_v30, 0.0 }
 0xd66   :  { %1071 = vadd.xlane.f32.xlu1 %v1070_v32  ;;  %1080 = vadd.xlane.f32.xlu0 %v1079_v16 }
 0xd68   :  { %v1924_v59 = vpop.eup %1923 }
 0xd69   :  { %v1926_v17 = vpop.eup %1925  ;;  %v1088_v60 = vsel %vm388_vm7, %v1924_v59, 0.0 }
 0xd6a   :  { %v1928_v63 = vpop.eup %1927  ;;  %1089 = vadd.xlane.f32.xlu1 %v1088_v60  ;;  %v1085_v22 = vsel %vm388_vm7, %v1926_v17, 0.0 }
 0xd6b   :  { %1086 = vadd.xlane.f32.xlu0 %v1085_v22  ;;  %v1082_v5 = vsel %vm388_vm7, %v1928_v63, 0.0 }
 0xd6c   :  { %v1930_v3 = vpop.eup %1929 }
 0xd6d   :  { %v1091_v57 = vsel %vm388_vm7, %v1930_v3, 0.0 }
 0xd6e   :  { %1083 = vadd.xlane.f32.xlu1 %v1082_v5 }
 0xd6f   :  { %1092 = vadd.xlane.f32.xlu0 %v1091_v57 }
 0xd7f   :  { %1114 = vrot.lane.b32.xlu1 %v2553_v58, %s2089_s8 }
 0xded   :  { %v1075_v55 = vpop.xlane.xlu0 %1074 }
 0xdee   :  { %1931 = vrcp.f32 %v1075_v55 }
 0xdef   :  { %v1078_v44 = vpop.xlane.xlu1 %1077 }
 0xdf0   :  { %1933 = vrcp.f32 %v1078_v44 }
 0xdf3   :  { %v1072_v62 = vpop.xlane.xlu1 %1071  ;;  %v1081_v6 = vpop.xlane.xlu0 %1080 }
 0xdf4   :  { %1935 = vrcp.f32 %v1072_v62 }
 0xdf5   :  { %1937 = vrcp.f32 %v1081_v6 }
 0xdf7   :  { %v1090_v51 = vpop.xlane.xlu1 %1089 }
 0xdf8   :  { %v1087_v53 = vpop.xlane.xlu0 %1086  ;;  %v1932_v15 = vpop.eup %1931 }
 0xdf9   :  { %1939 = vrcp.f32 %v1087_v53  ;;  %v1103_v4 = vmul.f32 %v1932_v15, %v1916_v31 }
 0xdfa   :  { %1941 = vrcp.f32 %v1090_v51  ;;  %v1934_v19 = vpop.eup %1933 }
 0xdfb   :  { %v1084_v61 = vpop.xlane.xlu1 %1083  ;;  %v1104_v12 = vmul.f32 %v1934_v19, %v1918_v39 }
 0xdfc   :  { %1943 = vrcp.f32 %v1084_v61  ;;  %v1093_v2 = vpop.xlane.xlu0 %1092 }
 0xdfd   :  { %1945 = vrcp.f32 %v1093_v2 }
 0xdfe   :  { %v1936_v26 = vpop.eup %1935 }
 0xdff   :  { %v1938_v58 = vpop.eup %1937  ;;  %v1115_v8 = vpop.permute.xlu1 %1114  ;;  %v1102_v24 = vmul.f32 %v1936_v26, %v1920_v56 }
 0xe00   :  { %v1105_v35 = vmul.f32 %v1938_v58, %v1922_v30  ;;  %1777 = vmatprep.subr.bf16.mxu1 %v1115_v8 }
 0xe01   :  { %1778 = vmatpush3.bf16.msra.mxu1 %v1115_v8  ;;  %v1110_v25 = vpack.c.bf16 %v1103_v4, %v1102_v24  ;;  %v1625_v8 = vld [vmem:[#allocation5 + $0x1] ss:$0 sm:$0xff] }
 0xe02   :  { %v1111_v11 = vpack.c.bf16 %v1105_v35, %v1104_v12  ;;  %1795 = vmatprep.subr.bf16.mxu1 %v2091_v7 }
 0xe03   :  { %1779 = vmatprep.mubr.msk.bf16.mxu1 %vm388_vm7, %v1110_v25  ;;  %v1940_v27 = vpop.eup %1939  ;;  %v1857_v25 = vld [vmem:[%s2696_s6 + $0x20] sm:$0xff]  }
 0xe04   :  { %1780 = vmatmul.mubr.msk.bf16.vlgmr.msra.gmra.mrb[16].mxu1 %vm388_vm7, %v1111_v11  ;;  %v1942_v33 = vpop.eup %1941  ;;  %v1107_v0 = vmul.f32 %v1940_v27, %v1926_v17  ;;  %v1858_v11 = vld [vmem:[%s2696_s6 + $0x28] sm:$0xff]   ;;  %v1859_v27 = vld [vmem:[%s2696_s6 + $0x30] sm:$0xff]  }
 0xe05   :  { %v1108_v1 = vmul.f32 %v1942_v33, %v1924_v59  ;;  %v1860_v33 = vld [vmem:[%s2696_s6 + $0x38] sm:$0xff]  }
 0xe06   :  { %v1944_v28 = vpop.eup %1943 }
 0xe07   :  { %v1946_v18 = vpop.eup %1945  ;;  %v1106_v29 = vmul.f32 %v1944_v28, %v1928_v63 }
 0xe08   :  { %v1109_v23 = vmul.f32 %v1946_v18, %v1930_v3 }
 0xe09   :  { %v1112_v34 = vpack.c.bf16 %v1107_v0, %v1106_v29 }
 0xe0a   :  { %v1113_v38 = vpack.c.bf16 %v1109_v23, %v1108_v1 }
 0xe0b   :  { %1783 = vmatprep.mubr.msk.bf16.mxu1 %vm388_vm7, %v1112_v34 }
 0xe0c   :  { %1784 = vmatmul.mubr.msk.bf16.gmra.mrb[20].mxu1 %vm388_vm7, %v1113_v38 }
 0xe0d   :  { %1799 = vmatprep.mubr.msk.bf16.mxu1 %vm2092_vm1, %v2091_v7 }
 0xed7   :  { %v1781_v47 = vpop.f32.mrb[16].mxu1 }
 0xed8   :  { %v1196_v48 = vmul.f32 %v1781_v47, %v2335_v9  ;;  %v1163_v52 = vpop.f32.mrb[17].mxu1 }
 0xed9   :  { %v1194_v54 = vmul.f32 %v1163_v52, %v2293_v49  ;;  %v1782_v31 = vpop.f32.mrb[18].mxu1 }
 0xeda   :  { %v1197_v36 = vmul.f32 %v1782_v31, %v2338_v10  ;;  %v1166_v37 = vpop.f32.mrb[19].mxu1 }
 0xedb   :  { %v1202_v39 = vadd.f32 %v1196_v48, %v1194_v54  ;;  %v1195_v43 = vmul.f32 %v1166_v37, %v2296_v50 }
 0xedd   :  { %v1203_v45 = vadd.f32 %v1197_v36, %v1195_v43 }
 0xedf   :  { %v1785_v56 = vpop.f32.mrb[20].mxu1 }
 0xee0   :  { %v1179_v30 = vpop.f32.mrb[21].mxu1  ;;  %v1200_v17 = vmul.f32 %v1785_v56, %v2366_v20 }
 0xee1   :  { %v1198_v32 = vmul.f32 %v1179_v30, %v2344_v13  ;;  %v1786_v16 = vpop.f32.mrb[22].mxu1 }
 0xee2   :  { %v1182_v59 = vpop.f32.mrb[23].mxu1  ;;  %v1201_v63 = vmul.f32 %v1786_v16, %v2369_v21 }
 0xee3   :  { %v1204_v9 = vadd.f32 %v1202_v39, %v1198_v32  ;;  %v1199_v60 = vmul.f32 %v1182_v59, %v2347_v14 }
 0xee5   :  { %v1206_v49 = vadd.f32 %v1204_v9, %v1200_v17  ;;  %v1205_v10 = vadd.f32 %v1203_v45, %v1199_v60 }
 0xee7   :  { %v1207_v22 = vadd.f32 %v1205_v10, %v1201_v63  ;;  %v1861_v63 = vld [vmem:[#allocation8] sm:$0xff]   ;;  %v1862_v10 = vld [vmem:[#allocation8 + $0x8] sm:$0xff]  }
 0xee9   :  { %v1208_v3 = vpack.c.bf16 %v1207_v22, %v1206_v49 }
 0xeeb   :  { %1792 = vmatmul.mubr.msk.bf16.vlgmr.msra.gmra.mrb[28].mxu0 %vm197_vm0, %v1208_v3 }
 0xeec   :  { %1811 = vmatprep.mubr.msk.bf16.mxu0 %vm2092_vm1, %v2091_v7  ;;  %1804 = vmatpush3.bf16.msra.mxu0 %v1857_v25 }
 0xeed   :  { %1805 = vmatprep.subr.bf16.mxu0 %v2091_v7 }
 0xef0   :  { %1806 = vmatpush3.bf16.msra.mxu0 %v1858_v11 }
 0xef1   :  { %1807 = vmatprep.subr.bf16.mxu0 %v2091_v7 }
 0xef4   :  { %1808 = vmatpush3.bf16.msra.mxu0 %v1859_v27 }
 0xef5   :  { %1809 = vmatprep.subr.bf16.mxu0 %v2091_v7 }
 0xef8   :  { %1810 = vmatpush3.bf16.msra.mxu0 %v1860_v33 }
 0xfbe   :  { %v1263_v50 = vpop.f32.mrb[28].mxu0 }
 0xfbf   :  { %v2627_v13 = vadd.f32 %v1263_v50, %v2519_v40  ;;  %v1793_v5 = vpop.f32.mrb[29].mxu0  ;;  %v1855_v40 = vld [vmem:[%s2695_s5 + $0x10] sm:$0xff]  }
 0xfc0   :  { %v1266_v20 = vpop.f32.mrb[30].mxu0  ;;  %1796 = vmatpush3.bf16.msra.mxu1 %v1855_v40 }
 0xfc1   :  { %v2630_v57 = vadd.f32 %v1266_v20, %v2522_v46  ;;  %v1794_v14 = vpop.f32.mrb[31].mxu0  ;;  %v1274_v21 = vmul.f32 %v2627_v13, %v2627_v13  ;;  %1797 = vmatprep.subr.bf16.mxu1 %v2091_v7  ;;  %v1856_v46 = vld [vmem:[%s2695_s5 + $0x18] sm:$0xff]  }
 0xfc2   :  { %v1648_v14 = vld [vmem:[%s2700_s10] ss:$0 sm:$0xff]  ;;  %s2051_s10 = scalar_lea.vmem %s1565_s18, 32 }
 0xfc3   :  { %v1276_v55 = vsel %vm197_vm0, %v1274_v21, 0.0  ;;  %v1275_v44 = vmul.f32 %v2630_v57, %v2630_v57  ;;  %p2052_p4 = scmp.ne.s32.totalorder %s1565_s18, %s2051_s10  ;;  %p2057_p6 = scmp.lt.s32.totalorder %s2051_s10, %s2051_s10 }
 0xfc4   :  { %1277 = vadd.xlane.f32.xlu0 %v1276_v55  ;;  %1798 = vmatpush3.bf16.msra.mxu1 %v1856_v46 }
 0xfc5   :  { %v1279_v62 = vsel %vm197_vm0, %v1275_v44, 0.0  ;;  %1815 = vmatprep.subr.bf16.mxu1 %v2091_v7  ;;  %p2058_p7 = por %p2057_p6, %p2056_p5 }
 0xfc7   :  { %p2059_p8 = pnand %p2058_p7, %p2052_p4 }
 0xfc8   :  { %1280 = vadd.xlane.f32.xlu0 %v1279_v62 }
0x1051   :  { %v1278_v6 = vpop.xlane.xlu0 %1277 }
0x1052   :  { %v1282_v51 = vmul.f32 0.03125, %v1278_v6 }
0x1054   :  { %v1284_v53 = vadd.f32 1e-06, %v1282_v51 }
0x1055   :  { %v1281_v61 = vpop.xlane.xlu0 %1280 }
0x1056   :  { %1947 = vrsqrt.f32 %v1284_v53  ;;  %v1283_v15 = vmul.f32 0.03125, %v1281_v61 }
0x1058   :  { %v1285_v2 = vadd.f32 1e-06, %v1283_v15 }
0x105a   :  { %1949 = vrsqrt.f32 %v1285_v2 }
0x1060   :  { %v1948_v19 = vpop.eup %1947 }
0x1061   :  { %v1288_v26 = vmul.f32 %v1948_v19, %v2627_v13 }
0x1063   :  { %v1296_v4 = vmul.f32 %v1625_v8, %v1288_v26 }
0x1064   :  { %v1950_v58 = vpop.eup %1949 }
0x1065   :  { %v1289_v24 = vmul.f32 %v1950_v58, %v2630_v57 }
0x1067   :  { %v1297_v12 = vmul.f32 %v1625_v8, %v1289_v24 }
0x1069   :  { %v1298_v35 = vpack.c.bf16 %v1297_v12, %v1296_v4 }
0x106b   :  { %1800 = vmatmul.mubr.msk.bf16.vlgmr.msra.gmra.mrb[24].mxu1 %vm197_vm0, %v1298_v35 }
0x106c   :  { %1819 = vmatprep.mubr.msk.bf16.mxu1 %vm2092_vm1, %v2091_v7  ;;  %1816 = vmatpush3.bf16.msra.mxu1 %v1861_v63  ;;  %vm1495_vm1 = vcmask 1040384  }
0x106d   :  { %1817 = vmatprep.subr.bf16.mxu1 %v2091_v7 }
0x1070   :  { %1818 = vmatpush3.bf16.msra.mxu1 %v1862_v10 }
0x113e   :  { %v1353_v28 = vpop.f32.mrb[24].mxu1 }
0x113f   :  { %1376 = vrot.lane.b32.xlu0 %v1353_v28, %s2089_s8  ;;  %v1801_v18 = vpop.f32.mrb[25].mxu1  ;;  %v1633_v1 = vmul.f32 -1.442695, %v1353_v28 }
0x1140   :  { %v1356_v29 = vpop.f32.mrb[26].mxu1 }
0x1141   :  { %1378 = vrot.lane.b32.xlu1 %v1356_v29, %s2089_s8  ;;  %v1802_v0 = vpop.f32.mrb[27].mxu1  ;;  %v1634_v23 = vmul.f32 -1.442695, %v1356_v29  ;;  %1951 = vpow2.f32 %v1633_v1 }
0x1143   :  { %1953 = vpow2.f32 %v1634_v23 }
0x114b   :  { %v1952_v34 = vpop.eup %1951 }
0x114c   :  { %v1366_v41 = vadd.f32 1.0, %v1952_v34 }
0x114d   :  { %v1954_v38 = vpop.eup %1953 }
0x114e   :  { %v1367_v42 = vadd.f32 1.0, %v1954_v38  ;;  %1955 = vrcp.f32 %v1366_v41 }
0x1150   :  { %1957 = vrcp.f32 %v1367_v42 }
0x1158   :  { %v1956_v47 = vpop.eup %1955 }
0x1159   :  { %v1372_v54 = vmul.f32 %v1956_v47, %v1353_v28 }
0x115a   :  { %v1958_v48 = vpop.eup %1957 }
0x115b   :  { %v1373_v31 = vmul.f32 %v1958_v48, %v1356_v29 }
0x11b1   :  { %v1377_v52 = vpop.permute.xlu0 %1376 }
0x11b2   :  { %v1382_v37 = vmul.f32 %v1377_v52, %v1372_v54 }
0x11b3   :  { %v1379_v36 = vpop.permute.xlu1 %1378 }
0x11b4   :  { %v1383_v39 = vmul.f32 %v1379_v36, %v1373_v31 }
0x11b6   :  { %v1384_v43 = vpack.c.bf16 %v1383_v39, %v1382_v37 }
0x11b8   :  { %1812 = vmatmul.mubr.msk.bf16.vlgmr.msra.gmra.mrb[32].mxu0 %vm781_vm8, %v1384_v43 }
0x128b   :  { %v1455_v45 = vpop.f32.mrb[32].mxu0 }
0x128c   :  { %v1462_v56 = vadd.f32 %v1455_v45, %v2627_v13  ;;  %v1813_v30 = vpop.f32.mrb[33].mxu0 }
0x128d   :  { %v1458_v32 = vpop.f32.mrb[34].mxu0 }
0x128e   :  { %v1463_v16 = vadd.f32 %v1458_v32, %v2630_v57  ;;  %v1814_v59 = vpop.f32.mrb[35].mxu0  ;;  %v1465_v17 = vmul.f32 %v1462_v56, %v1462_v56 }
0x1290   :  { %v1467_v9 = vsel %vm197_vm0, %v1465_v17, 0.0  ;;  %v1466_v60 = vmul.f32 %v1463_v16, %v1463_v16 }
0x1291   :  { %1468 = vadd.xlane.f32.xlu1 %v1467_v9 }
0x1292   :  { %v1470_v49 = vsel %vm197_vm0, %v1466_v60, 0.0 }
0x1293   :  { %1471 = vadd.xlane.f32.xlu0 %v1470_v49 }
0x131e   :  { %v1469_v22 = vpop.xlane.xlu1 %1468 }
0x131f   :  { %v1473_v3 = vmul.f32 0.03125, %v1469_v22 }
0x1320   :  { %v1472_v50 = vpop.xlane.xlu0 %1471 }
0x1321   :  { %v1475_v13 = vadd.f32 1e-06, %v1473_v3  ;;  %v1474_v5 = vmul.f32 0.03125, %v1472_v50 }
0x1323   :  { %1959 = vrsqrt.f32 %v1475_v13  ;;  %v1476_v20 = vadd.f32 1e-06, %v1474_v5 }
0x1325   :  { %1961 = vrsqrt.f32 %v1476_v20 }
0x132d   :  { %v1960_v57 = vpop.eup %1959 }
0x132e   :  { %v1479_v21 = vmul.f32 %v1960_v57, %v1462_v56 }
0x132f   :  { %v1962_v55 = vpop.eup %1961 }
0x1330   :  { %v1487_v44 = vmul.f32 %v1648_v14, %v1479_v21  ;;  %v1480_v62 = vmul.f32 %v1962_v55, %v1463_v16 }
0x1332   :  { %v1488_v7 = vmul.f32 %v1648_v14, %v1480_v62  ;;  %v1490_v40 = vrot.slane %v1487_v44, 7 }
0x1334   :  { %v1493_v46 = vrot.slane %v1488_v7, 6 }
0x1336   :  { %v1496_v6 = vsel %vm1495_vm1, %v1490_v40, %v1493_v46 }
0x1337   :  { %v1497_v51 = vpack.c.bf16 %v1496_v6, %v1496_v6 }
0x1339   :  { %1820 = vmatmul.mubr.msk.bf16.vlgmr.msra.gmra.mrb[28].mxu1 %vm197_vm0, %v1497_v51 }
0x140c   :  { %v1551_v53 = vpop.f32.mrb[28].mxu1 }
0x140d   :  { %1557 = vst [vmem:[#allocation10] sm:$0x3] %v1551_v53  ;;  %v1821_v61 = vpop.f32.mrb[29].mxu1 }
0x140e   :  { %v1554_v15 = vpop.f32.mrb[30].mxu1 }
0x140f   :  { %2062 = shalt.err (!%p2059_p8)
}
0x1410   :  { %s2063_s28 = scalar_lea.hbm %s2702_s12, 32 }
0x1411   :  { %p2064_p9 = scmp.ne.s32.totalorder %s2702_s12, %s2063_s28  ;;  %p2067_p10 = scmp.lt.u32.totalorder %s2063_s28, %s2702_s12 }
0x1413   :  { %p2069_p11 = pnand %p2067_p10, %p2064_p9 }
0x1415   :  { %2072 = shalt.err (!%p2069_p11)
}
0x1416   :  { %1567 = dma.vmem_to_hbm [thread:$0]  %s1565_s18, 32, %s2702_s12, [#allocation4]   ;;  %v1822_v2 = vpop.f32.mrb[31].mxu1 }
0x1417   :  { %2079 = dma.done.wait [#allocation4], 32  }
0x1418   :  { %2080 = vsyncadd [#allocation4], 4294967264 }
0x1419   :  { %1571 = vsyncpa [#allocation3], 1 }
0x141a   :  { %1572 = vsyncpa [#allocation6], 1 }
0x141b   :  { %1573 = vsyncpa [#allocation9], 1 }
0x141c   :  { %1574 = vsyncpa [#allocation4], 1 }

</bundles_post_ra>
